<compile_context>
chip_gen: v6e
topology: v6e:2x2x1
jax: 0.10.0
libtpu: 0.0.40
codegen_flags: <defaults>
</compile_context>

<pallas_src>
import jax
import jax.numpy as jnp
from jax import lax
from jax.experimental import pallas as pl
from jax.experimental.pallas import tpu as pltpu

N_EMBED = 48                       # reference: 512
N_HEAD = 6
HEAD_SIZE = N_EMBED // N_HEAD      # 8
N_LAYER = 2                        # reference: 6
BLOCK_SIZE = 16                    # reference: 256 (max sequence length)
VOCAB = 65
VOCAB_PAD = ((VOCAB + 127) // 128) * 128    # 128: lane-dense lm-head output
LN_EPS = 1e-5                      # torch.nn.LayerNorm default
# dropout = 0.2 in the reference; eval-mode dropout is identity.
# TODO(synk): training-mode dropout (attention/proj/ffn) is not implemented.


def _layernorm(z, g, b):
    mu = jnp.mean(z, axis=-1, keepdims=True)
    var = jnp.mean((z - mu) ** 2, axis=-1, keepdims=True)
    return (z - mu) * lax.rsqrt(var + LN_EPS) * g + b


# ---------------- fused transformer stack + lm head (ONE pallas_call) --------

def transformer_stack_and_head(params, x):
    """x: (B, T, D) f32  ->  padded logits (B*T, VOCAB_PAD) f32."""
    B, T, D = x.shape
    L = params["wqkv"].shape[0]
    H, hs = N_HEAD, HEAD_SIZE
    BT = B * T
    scale = float(N_EMBED) ** -0.5   # reference scales by C**-0.5, C = n_embed

    x2 = x.reshape(BT, D).astype(jnp.float32)
    # Additive causal mask built ONCE in JAX (0 where allowed, -1e30 masked).
    mask = jnp.where(jnp.tril(jnp.ones((T, T), dtype=bool)),
                     0.0, -1e30).astype(jnp.float32)

    def kernel(x_ref, mask_ref, ln1g_ref, ln1b_ref, wqkv_ref, wproj_ref,
               bproj_ref, ln2g_ref, ln2b_ref, wff1_ref, bff1_ref,
               wff2_ref, bff2_ref, lmw_ref, lmb_ref,
               logits_ref, acc_ref, qkv_ref, sa_ref):
        layer = pl.program_id(0)

        @pl.when(layer == 0)
        def _():
            acc_ref[...] = x_ref[...]

        xcur = acc_ref[...]                                   # (B*T, D)

        # ---- self-attention sub-block: x += proj(cat_h softmax(qk^T) v) ----
        xn = _layernorm(xcur, ln1g_ref[0], ln1b_ref[0])
        # ONE lane-wide QKV matmul for all heads and all B*T rows.
        qkv_ref[...] = jnp.dot(xn, wqkv_ref[0],
                               preferred_element_type=jnp.float32)  # (BT, 3*H*hs)

        # Scores for every (batch, head) pair, stacked -> ONE softmax.
        s_list = []
        for b in range(B):
            r0 = b * T
            for h in range(H):
                q_h = qkv_ref[r0:r0 + T, h * hs:(h + 1) * hs]          # (T, hs)
                k_h = qkv_ref[r0:r0 + T, (H + h) * hs:(H + h + 1) * hs]
                s_list.append(lax.dot_general(
                    q_h, k_h, (((1,), (1,)), ((), ())),
                    preferred_element_type=jnp.float32))               # q @ k^T
        s = jnp.stack(s_list, axis=0) * scale + mask_ref[...]          # (B*H, T, T)
        m = jnp.max(s, axis=-1, keepdims=True)
        p = jnp.exp(s - m)
        w = p * pl.reciprocal(jnp.sum(p, axis=-1, keepdims=True), approx=True)

        # Weighted values written head-major into sa_ref -> (B*T, H*hs).
        for b in range(B):
            r0 = b * T
            for h in range(H):
                v_h = qkv_ref[r0:r0 + T, (2 * H + h) * hs:(2 * H + h + 1) * hs]
                sa_ref[r0:r0 + T, h * hs:(h + 1) * hs] = jnp.dot(
                    w[b * H + h], v_h, preferred_element_type=jnp.float32)

        # ONE flat proj matmul + bias + residual.
        xcur = xcur + jnp.dot(sa_ref[...], wproj_ref[0],
                              preferred_element_type=jnp.float32) + bproj_ref[0]

        # ---- feed-forward sub-block: x += W2 relu(W1 ln2(x) + b1) + b2 ----
        xn2 = _layernorm(xcur, ln2g_ref[0], ln2b_ref[0])
        hmid = jnp.maximum(
            jnp.dot(xn2, wff1_ref[0], preferred_element_type=jnp.float32)
            + bff1_ref[0], 0.0)
        xcur = xcur + jnp.dot(hmid, wff2_ref[0],
                              preferred_element_type=jnp.float32) + bff2_ref[0]
        acc_ref[...] = xcur

        # ---- fused lm head: only the final layer writes the output --------
        @pl.when(layer == pl.num_programs(0) - 1)
        def _():
            logits_ref[...] = (
                jnp.dot(xcur, lmw_ref[...], preferred_element_type=jnp.float32)
                + lmb_ref[...]).astype(logits_ref.dtype)

    full2 = lambda l: (0, 0)

    def per_layer(*dims):
        zeros = (0,) * len(dims)
        return pl.BlockSpec((1,) + tuple(dims), lambda l, _z=zeros: (l,) + _z)

    in_specs = [
        pl.BlockSpec((BT, D), full2),             # x (resident across layers)
        pl.BlockSpec((T, T), full2),              # additive causal mask
        per_layer(1, D), per_layer(1, D),         # ln1 gamma, beta
        per_layer(D, 3 * H * hs),                 # fused wqkv
        per_layer(H * hs, D),                     # flat w_proj
        per_layer(1, D),                          # b_proj
        per_layer(1, D), per_layer(1, D),         # ln2 gamma, beta
        per_layer(D, 4 * D), per_layer(1, 4 * D), # ff1 w, b
        per_layer(4 * D, D), per_layer(1, D),     # ff2 w, b
        pl.BlockSpec((D, VOCAB_PAD), full2),      # lm_w (lane-dense, padded)
        pl.BlockSpec((1, VOCAB_PAD), full2),      # lm_b
    ]
    return pl.pallas_call(
        kernel,
        out_shape=jax.ShapeDtypeStruct((BT, VOCAB_PAD), jnp.float32),
        grid=(L,),                                # layer axis only; weights DMA'd once
        in_specs=in_specs,
        out_specs=pl.BlockSpec((BT, VOCAB_PAD), full2),
        scratch_shapes=[pltpu.VMEM((BT, D), jnp.float32),          # activation
                        pltpu.VMEM((BT, 3 * H * hs), jnp.float32), # qkv slab
                        pltpu.VMEM((BT, H * hs), jnp.float32)],    # head outputs
        compiler_params=pltpu.CompilerParams(
            dimension_semantics=("arbitrary",)),
    )(x2, mask, params["ln1_g"], params["ln1_b"], params["wqkv"],
      params["w_proj"], params["b_proj"], params["ln2_g"], params["ln2_b"],
      params["w_ff1"], params["b_ff1"], params["w_ff2"], params["b_ff2"],
      params["lm_w"], params["lm_b"])


# --------------------------- parameters --------------------------------------

def init_params(key):
    def nrm(k, shape, std=0.02):
        return (std * jax.random.normal(k, shape)).astype(jnp.float32)

    D, H, hs, L = N_EMBED, N_HEAD, HEAD_SIZE, N_LAYER
    keys = jax.random.split(key, 7)
    lm_w = jnp.zeros((D, VOCAB_PAD), jnp.float32).at[:, :VOCAB].set(
        nrm(keys[2], (D, VOCAB)))
    return {
        "tok_emb": nrm(keys[0], (VOCAB, D)),
        "pos_emb": nrm(keys[1], (BLOCK_SIZE, D)),
        "lm_w": lm_w,                                     # padded cols are zero
        "lm_b": jnp.zeros((1, VOCAB_PAD), jnp.float32),
        "ln1_g": jnp.ones((L, 1, D), jnp.float32),
        "ln1_b": jnp.zeros((L, 1, D), jnp.float32),
        "ln2_g": jnp.ones((L, 1, D), jnp.float32),
        "ln2_b": jnp.zeros((L, 1, D), jnp.float32),
        # Fused QKV: columns [q_h0..q_h5 | k_h0..k_h5 | v_h0..v_h5], hs each.
        "wqkv": nrm(keys[3], (L, D, 3 * H * hs)),
        # Flat proj: row block h*hs:(h+1)*hs corresponds to head h (cat order).
        "w_proj": nrm(keys[4], (L, H * hs, D)),
        "b_proj": jnp.zeros((L, 1, D), jnp.float32),
        "w_ff1": nrm(keys[5], (L, D, 4 * D)),
        "b_ff1": jnp.zeros((L, 1, 4 * D), jnp.float32),
        "w_ff2": nrm(keys[6], (L, 4 * D, D)),
        "b_ff2": jnp.zeros((L, 1, D), jnp.float32),
    }


# --------------------------- forward ------------------------------------------

def forward(params, idx, targets=None):
    """idx: (B, T) int32 tokens -> (logits (B, T, VOCAB), loss)."""
    B, T = idx.shape
    x = params["tok_emb"][idx] + params["pos_emb"][:T]    # embedding gather (JAX glue)
    logits_pad = transformer_stack_and_head(params, x)    # ONE fused pallas_call
    logits = logits_pad[:, :VOCAB].reshape(B, T, VOCAB)   # drop lane padding
    loss = None
    if targets is not None:                                # F.cross_entropy (JAX glue)
        lg = logits.reshape(B * T, VOCAB)
        tg = targets.reshape(B * T)
        logp = jax.nn.log_softmax(lg, axis=-1)
        loss = -jnp.mean(jnp.take_along_axis(logp, tg[:, None], axis=-1))
    return logits, loss


# --------------------------- main ---------------------------------------------

if __name__ == "__main__":
    key = jax.random.PRNGKey(0)
    pkey, dkey = jax.random.split(key)
    params = init_params(pkey)

    B, T = 2, 8
    idx = jax.random.randint(dkey, (B, T), 0, VOCAB, dtype=jnp.int32)

    logits, loss = forward(params, idx, targets=None)
    logits = jax.block_until_ready(logits)

    assert logits.shape == (B, T, VOCAB), logits.shape
    assert loss is None
    assert bool(jnp.all(jnp.isfinite(logits)))
    print("KERNEL_OK")
</pallas_src>

<mosaic_0001>
module attributes {stable_mosaic.version = 11 : i64} {
  func.func @kernel(%arg0: i32, %arg1: memref<16x48xf32, #tpu.memory_space<vmem>>, %arg2: memref<8x8xf32, #tpu.memory_space<vmem>>, %arg3: memref<1x1x48xf32, #tpu.memory_space<vmem>>, %arg4: memref<1x1x48xf32, #tpu.memory_space<vmem>>, %arg5: memref<1x48x144xf32, #tpu.memory_space<vmem>>, %arg6: memref<1x48x48xf32, #tpu.memory_space<vmem>>, %arg7: memref<1x1x48xf32, #tpu.memory_space<vmem>>, %arg8: memref<1x1x48xf32, #tpu.memory_space<vmem>>, %arg9: memref<1x1x48xf32, #tpu.memory_space<vmem>>, %arg10: memref<1x48x192xf32, #tpu.memory_space<vmem>>, %arg11: memref<1x1x192xf32, #tpu.memory_space<vmem>>, %arg12: memref<1x192x48xf32, #tpu.memory_space<vmem>>, %arg13: memref<1x1x48xf32, #tpu.memory_space<vmem>>, %arg14: memref<48x128xf32, #tpu.memory_space<vmem>>, %arg15: memref<1x128xf32, #tpu.memory_space<vmem>>, %arg16: memref<16x128xf32, #tpu.memory_space<vmem>>, %arg17: memref<16x48xf32, #tpu.memory_space<vmem>>, %arg18: memref<16x144xf32, #tpu.memory_space<vmem>>, %arg19: memref<16x48xf32, #tpu.memory_space<vmem>>) attributes {dimension_semantics = [#tpu.dimension_semantics<arbitrary>], iteration_bounds = array<i64: 2>, scalar_prefetch = 0 : i64, scratch_operands = 3 : i64, tpu.core_type = #tpu.core_type<tc>, window_params = [{pipeline_mode = #tpu.pipeline_mode<synchronous>, transform_indices = @transform_0, window_bounds = array<i64: 16, 48>}, {pipeline_mode = #tpu.pipeline_mode<synchronous>, transform_indices = @transform_1, window_bounds = array<i64: 8, 8>}, {transform_indices = @transform_2, window_bounds = array<i64: 1, 1, 48>}, {transform_indices = @transform_3, window_bounds = array<i64: 1, 1, 48>}, {transform_indices = @transform_4, window_bounds = array<i64: 1, 48, 144>}, {transform_indices = @transform_5, window_bounds = array<i64: 1, 48, 48>}, {transform_indices = @transform_6, window_bounds = array<i64: 1, 1, 48>}, {transform_indices = @transform_7, window_bounds = array<i64: 1, 1, 48>}, {transform_indices = @transform_8, window_bounds = array<i64: 1, 1, 48>}, {transform_indices = @transform_9, window_bounds = array<i64: 1, 48, 192>}, {transform_indices = @transform_10, window_bounds = array<i64: 1, 1, 192>}, {transform_indices = @transform_11, window_bounds = array<i64: 1, 192, 48>}, {transform_indices = @transform_12, window_bounds = array<i64: 1, 1, 48>}, {pipeline_mode = #tpu.pipeline_mode<synchronous>, transform_indices = @transform_13, window_bounds = array<i64: 48, 128>}, {pipeline_mode = #tpu.pipeline_mode<synchronous>, transform_indices = @transform_14, window_bounds = array<i64: 1, 128>}, {pipeline_mode = #tpu.pipeline_mode<synchronous>, transform_indices = @transform_15, window_bounds = array<i64: 16, 128>}]} {
    %c0_i32 = arith.constant 0 : i32
    %0 = arith.cmpi eq, %arg0, %c0_i32 : i32
    %1 = arith.extui %0 : i1 to i32
    %c0_i32_0 = arith.constant 0 : i32
    %2 = arith.cmpi ne, %1, %c0_i32_0 : i32
    scf.if %2 {
      %c0_164 = arith.constant 0 : index
      %c0_165 = arith.constant 0 : index
      %215 = vector.load %arg1[%c0_164, %c0_165] : memref<16x48xf32, #tpu.memory_space<vmem>>, vector<16x48xf32>
      %c0_166 = arith.constant 0 : index
      %c0_167 = arith.constant 0 : index
      %216 = vector.load %arg17[%c0_166, %c0_167] : memref<16x48xf32, #tpu.memory_space<vmem>>, vector<16x48xf32>
      tpu.vector_store %arg17[%c0_166, %c0_167], %215 {strides = array<i32>} : memref<16x48xf32, #tpu.memory_space<vmem>>, vector<16x48xf32>,
    } else {
    }
    %c0 = arith.constant 0 : index
    %c0_1 = arith.constant 0 : index
    %3 = vector.load %arg17[%c0, %c0_1] : memref<16x48xf32, #tpu.memory_space<vmem>>, vector<16x48xf32>
    %c0_2 = arith.constant 0 : index
    %c0_3 = arith.constant 0 : index
    %c0_4 = arith.constant 0 : index
    %4 = vector.load %arg3[%c0_2, %c0_3, %c0_4] : memref<1x1x48xf32, #tpu.memory_space<vmem>>, vector<1x1x48xf32>
    %5 = vector.shape_cast %4 : vector<1x1x48xf32> to vector<1x48xf32>
    %c0_5 = arith.constant 0 : index
    %c0_6 = arith.constant 0 : index
    %c0_7 = arith.constant 0 : index
    %6 = vector.load %arg4[%c0_5, %c0_6, %c0_7] : memref<1x1x48xf32, #tpu.memory_space<vmem>>, vector<1x1x48xf32>
    %7 = vector.shape_cast %6 : vector<1x1x48xf32> to vector<1x48xf32>
    %cst = arith.constant dense<0.000000e+00> : vector<16xf32>
    %8 = vector.multi_reduction <add>, %3, %cst [1] : vector<16x48xf32> to vector<16xf32>
    %9 = vector.shape_cast %8 : vector<16xf32> to vector<16x1xf32>
    %cst_8 = arith.constant 4.800000e+01 : f32
    %10 = vector.broadcast %cst_8 : f32 to vector<16x1xf32>
    %11 = arith.divf %9, %10 : vector<16x1xf32>
    %12 = vector.broadcast %11 : vector<16x1xf32> to vector<16x48xf32>
    %13 = arith.subf %3, %12 : vector<16x48xf32>
    %14 = arith.mulf %13, %13 : vector<16x48xf32>
    %cst_9 = arith.constant dense<0.000000e+00> : vector<16xf32>
    %15 = vector.multi_reduction <add>, %14, %cst_9 [1] : vector<16x48xf32> to vector<16xf32>
    %16 = vector.shape_cast %15 : vector<16xf32> to vector<16x1xf32>
    %cst_10 = arith.constant 4.800000e+01 : f32
    %17 = vector.broadcast %cst_10 : f32 to vector<16x1xf32>
    %18 = arith.divf %16, %17 : vector<16x1xf32>
    %19 = vector.broadcast %11 : vector<16x1xf32> to vector<16x48xf32>
    %20 = arith.subf %3, %19 : vector<16x48xf32>
    %cst_11 = arith.constant 9.99999974E-6 : f32
    %21 = vector.broadcast %cst_11 : f32 to vector<16x1xf32>
    %22 = arith.addf %18, %21 : vector<16x1xf32>
    %23 = math.rsqrt %22 : vector<16x1xf32>
    %24 = vector.broadcast %23 : vector<16x1xf32> to vector<16x48xf32>
    %25 = arith.mulf %20, %24 : vector<16x48xf32>
    %26 = vector.broadcast %5 : vector<1x48xf32> to vector<16x48xf32>
    %27 = arith.mulf %25, %26 : vector<16x48xf32>
    %28 = vector.broadcast %7 : vector<1x48xf32> to vector<16x48xf32>
    %29 = arith.addf %27, %28 : vector<16x48xf32>
    %c0_12 = arith.constant 0 : index
    %c0_13 = arith.constant 0 : index
    %c0_14 = arith.constant 0 : index
    %30 = vector.load %arg5[%c0_12, %c0_13, %c0_14] : memref<1x48x144xf32, #tpu.memory_space<vmem>>, vector<1x48x144xf32>
    %31 = vector.shape_cast %30 : vector<1x48x144xf32> to vector<48x144xf32>
    %cst_15 = arith.constant dense<0.000000e+00> : vector<16x144xf32>
    %32 = tpu.matmul %29, %31, %cst_15 {dimension_numbers = #tpu.dot_dimension_numbers<[1], [0], [0], [1], [0, 0, 1, 1], [], []>} : vector<16x48xf32>, vector<48x144xf32>, vector<16x144xf32> -> vector<16x144xf32>
    %c0_16 = arith.constant 0 : index
    %c0_17 = arith.constant 0 : index
    %33 = vector.load %arg18[%c0_16, %c0_17] : memref<16x144xf32, #tpu.memory_space<vmem>>, vector<16x144xf32>
    tpu.vector_store %arg18[%c0_16, %c0_17], %32 {strides = array<i32>} : memref<16x144xf32, #tpu.memory_space<vmem>>, vector<16x144xf32>,
    %c0_18 = arith.constant 0 : index
    %c0_19 = arith.constant 0 : index
    %34 = vector.load %arg18[%c0_18, %c0_19] : memref<16x144xf32, #tpu.memory_space<vmem>>, vector<8x8xf32>
    %c0_20 = arith.constant 0 : index
    %c48 = arith.constant 48 : index
    %35 = vector.load %arg18[%c0_20, %c48] : memref<16x144xf32, #tpu.memory_space<vmem>>, vector<8x8xf32>
    %cst_21 = arith.constant dense<0.000000e+00> : vector<8x8xf32>
    %36 = tpu.matmul %34, %35, %cst_21 {dimension_numbers = #tpu.dot_dimension_numbers<[1], [1], [0], [0], [0, 0, 1, 0], [], []>} : vector<8x8xf32>, vector<8x8xf32>, vector<8x8xf32> -> vector<8x8xf32>
    %c0_22 = arith.constant 0 : index
    %c8 = arith.constant 8 : index
    %37 = vector.load %arg18[%c0_22, %c8] : memref<16x144xf32, #tpu.memory_space<vmem>>, vector<8x8xf32>
    %c0_23 = arith.constant 0 : index
    %c56 = arith.constant 56 : index
    %38 = vector.load %arg18[%c0_23, %c56] : memref<16x144xf32, #tpu.memory_space<vmem>>, vector<8x8xf32>
    %cst_24 = arith.constant dense<0.000000e+00> : vector<8x8xf32>
    %39 = tpu.matmul %37, %38, %cst_24 {dimension_numbers = #tpu.dot_dimension_numbers<[1], [1], [0], [0], [0, 0, 1, 0], [], []>} : vector<8x8xf32>, vector<8x8xf32>, vector<8x8xf32> -> vector<8x8xf32>
    %c0_25 = arith.constant 0 : index
    %c16 = arith.constant 16 : index
    %40 = vector.load %arg18[%c0_25, %c16] : memref<16x144xf32, #tpu.memory_space<vmem>>, vector<8x8xf32>
    %c0_26 = arith.constant 0 : index
    %c64 = arith.constant 64 : index
    %41 = vector.load %arg18[%c0_26, %c64] : memref<16x144xf32, #tpu.memory_space<vmem>>, vector<8x8xf32>
    %cst_27 = arith.constant dense<0.000000e+00> : vector<8x8xf32>
    %42 = tpu.matmul %40, %41, %cst_27 {dimension_numbers = #tpu.dot_dimension_numbers<[1], [1], [0], [0], [0, 0, 1, 0], [], []>} : vector<8x8xf32>, vector<8x8xf32>, vector<8x8xf32> -> vector<8x8xf32>
    %c0_28 = arith.constant 0 : index
    %c24 = arith.constant 24 : index
    %43 = vector.load %arg18[%c0_28, %c24] : memref<16x144xf32, #tpu.memory_space<vmem>>, vector<8x8xf32>
    %c0_29 = arith.constant 0 : index
    %c72 = arith.constant 72 : index
    %44 = vector.load %arg18[%c0_29, %c72] : memref<16x144xf32, #tpu.memory_space<vmem>>, vector<8x8xf32>
    %cst_30 = arith.constant dense<0.000000e+00> : vector<8x8xf32>
    %45 = tpu.matmul %43, %44, %cst_30 {dimension_numbers = #tpu.dot_dimension_numbers<[1], [1], [0], [0], [0, 0, 1, 0], [], []>} : vector<8x8xf32>, vector<8x8xf32>, vector<8x8xf32> -> vector<8x8xf32>
    %c0_31 = arith.constant 0 : index
    %c32 = arith.constant 32 : index
    %46 = vector.load %arg18[%c0_31, %c32] : memref<16x144xf32, #tpu.memory_space<vmem>>, vector<8x8xf32>
    %c0_32 = arith.constant 0 : index
    %c80 = arith.constant 80 : index
    %47 = vector.load %arg18[%c0_32, %c80] : memref<16x144xf32, #tpu.memory_space<vmem>>, vector<8x8xf32>
    %cst_33 = arith.constant dense<0.000000e+00> : vector<8x8xf32>
    %48 = tpu.matmul %46, %47, %cst_33 {dimension_numbers = #tpu.dot_dimension_numbers<[1], [1], [0], [0], [0, 0, 1, 0], [], []>} : vector<8x8xf32>, vector<8x8xf32>, vector<8x8xf32> -> vector<8x8xf32>
    %c0_34 = arith.constant 0 : index
    %c40 = arith.constant 40 : index
    %49 = vector.load %arg18[%c0_34, %c40] : memref<16x144xf32, #tpu.memory_space<vmem>>, vector<8x8xf32>
    %c0_35 = arith.constant 0 : index
    %c88 = arith.constant 88 : index
    %50 = vector.load %arg18[%c0_35, %c88] : memref<16x144xf32, #tpu.memory_space<vmem>>, vector<8x8xf32>
    %cst_36 = arith.constant dense<0.000000e+00> : vector<8x8xf32>
    %51 = tpu.matmul %49, %50, %cst_36 {dimension_numbers = #tpu.dot_dimension_numbers<[1], [1], [0], [0], [0, 0, 1, 0], [], []>} : vector<8x8xf32>, vector<8x8xf32>, vector<8x8xf32> -> vector<8x8xf32>
    %c8_37 = arith.constant 8 : index
    %c0_38 = arith.constant 0 : index
    %52 = vector.load %arg18[%c8_37, %c0_38] : memref<16x144xf32, #tpu.memory_space<vmem>>, vector<8x8xf32>
    %c8_39 = arith.constant 8 : index
    %c48_40 = arith.constant 48 : index
    %53 = vector.load %arg18[%c8_39, %c48_40] : memref<16x144xf32, #tpu.memory_space<vmem>>, vector<8x8xf32>
    %cst_41 = arith.constant dense<0.000000e+00> : vector<8x8xf32>
    %54 = tpu.matmul %52, %53, %cst_41 {dimension_numbers = #tpu.dot_dimension_numbers<[1], [1], [0], [0], [0, 0, 1, 0], [], []>} : vector<8x8xf32>, vector<8x8xf32>, vector<8x8xf32> -> vector<8x8xf32>
    %c8_42 = arith.constant 8 : index
    %c8_43 = arith.constant 8 : index
    %55 = vector.load %arg18[%c8_42, %c8_43] : memref<16x144xf32, #tpu.memory_space<vmem>>, vector<8x8xf32>
    %c8_44 = arith.constant 8 : index
    %c56_45 = arith.constant 56 : index
    %56 = vector.load %arg18[%c8_44, %c56_45] : memref<16x144xf32, #tpu.memory_space<vmem>>, vector<8x8xf32>
    %cst_46 = arith.constant dense<0.000000e+00> : vector<8x8xf32>
    %57 = tpu.matmul %55, %56, %cst_46 {dimension_numbers = #tpu.dot_dimension_numbers<[1], [1], [0], [0], [0, 0, 1, 0], [], []>} : vector<8x8xf32>, vector<8x8xf32>, vector<8x8xf32> -> vector<8x8xf32>
    %c8_47 = arith.constant 8 : index
    %c16_48 = arith.constant 16 : index
    %58 = vector.load %arg18[%c8_47, %c16_48] : memref<16x144xf32, #tpu.memory_space<vmem>>, vector<8x8xf32>
    %c8_49 = arith.constant 8 : index
    %c64_50 = arith.constant 64 : index
    %59 = vector.load %arg18[%c8_49, %c64_50] : memref<16x144xf32, #tpu.memory_space<vmem>>, vector<8x8xf32>
    %cst_51 = arith.constant dense<0.000000e+00> : vector<8x8xf32>
    %60 = tpu.matmul %58, %59, %cst_51 {dimension_numbers = #tpu.dot_dimension_numbers<[1], [1], [0], [0], [0, 0, 1, 0], [], []>} : vector<8x8xf32>, vector<8x8xf32>, vector<8x8xf32> -> vector<8x8xf32>
    %c8_52 = arith.constant 8 : index
    %c24_53 = arith.constant 24 : index
    %61 = vector.load %arg18[%c8_52, %c24_53] : memref<16x144xf32, #tpu.memory_space<vmem>>, vector<8x8xf32>
    %c8_54 = arith.constant 8 : index
    %c72_55 = arith.constant 72 : index
    %62 = vector.load %arg18[%c8_54, %c72_55] : memref<16x144xf32, #tpu.memory_space<vmem>>, vector<8x8xf32>
    %cst_56 = arith.constant dense<0.000000e+00> : vector<8x8xf32>
    %63 = tpu.matmul %61, %62, %cst_56 {dimension_numbers = #tpu.dot_dimension_numbers<[1], [1], [0], [0], [0, 0, 1, 0], [], []>} : vector<8x8xf32>, vector<8x8xf32>, vector<8x8xf32> -> vector<8x8xf32>
    %c8_57 = arith.constant 8 : index
    %c32_58 = arith.constant 32 : index
    %64 = vector.load %arg18[%c8_57, %c32_58] : memref<16x144xf32, #tpu.memory_space<vmem>>, vector<8x8xf32>
    %c8_59 = arith.constant 8 : index
    %c80_60 = arith.constant 80 : index
    %65 = vector.load %arg18[%c8_59, %c80_60] : memref<16x144xf32, #tpu.memory_space<vmem>>, vector<8x8xf32>
    %cst_61 = arith.constant dense<0.000000e+00> : vector<8x8xf32>
    %66 = tpu.matmul %64, %65, %cst_61 {dimension_numbers = #tpu.dot_dimension_numbers<[1], [1], [0], [0], [0, 0, 1, 0], [], []>} : vector<8x8xf32>, vector<8x8xf32>, vector<8x8xf32> -> vector<8x8xf32>
    %c8_62 = arith.constant 8 : index
    %c40_63 = arith.constant 40 : index
    %67 = vector.load %arg18[%c8_62, %c40_63] : memref<16x144xf32, #tpu.memory_space<vmem>>, vector<8x8xf32>
    %c8_64 = arith.constant 8 : index
    %c88_65 = arith.constant 88 : index
    %68 = vector.load %arg18[%c8_64, %c88_65] : memref<16x144xf32, #tpu.memory_space<vmem>>, vector<8x8xf32>
    %cst_66 = arith.constant dense<0.000000e+00> : vector<8x8xf32>
    %69 = tpu.matmul %67, %68, %cst_66 {dimension_numbers = #tpu.dot_dimension_numbers<[1], [1], [0], [0], [0, 0, 1, 0], [], []>} : vector<8x8xf32>, vector<8x8xf32>, vector<8x8xf32> -> vector<8x8xf32>
    %70 = vector.shape_cast %36 : vector<8x8xf32> to vector<1x8x8xf32>
    %71 = vector.shape_cast %39 : vector<8x8xf32> to vector<1x8x8xf32>
    %72 = vector.shape_cast %42 : vector<8x8xf32> to vector<1x8x8xf32>
    %73 = vector.shape_cast %45 : vector<8x8xf32> to vector<1x8x8xf32>
    %74 = vector.shape_cast %48 : vector<8x8xf32> to vector<1x8x8xf32>
    %75 = vector.shape_cast %51 : vector<8x8xf32> to vector<1x8x8xf32>
    %76 = vector.shape_cast %54 : vector<8x8xf32> to vector<1x8x8xf32>
    %77 = vector.shape_cast %57 : vector<8x8xf32> to vector<1x8x8xf32>
    %78 = vector.shape_cast %60 : vector<8x8xf32> to vector<1x8x8xf32>
    %79 = vector.shape_cast %63 : vector<8x8xf32> to vector<1x8x8xf32>
    %80 = vector.shape_cast %66 : vector<8x8xf32> to vector<1x8x8xf32>
    %81 = vector.shape_cast %69 : vector<8x8xf32> to vector<1x8x8xf32>
    %82 = tpu.concatenate %70, %71, %72, %73, %74, %75, %76, %77, %78, %79, %80, %81 in 0 : vector<1x8x8xf32>, vector<1x8x8xf32>, vector<1x8x8xf32>, vector<1x8x8xf32>, vector<1x8x8xf32>, vector<1x8x8xf32>, vector<1x8x8xf32>, vector<1x8x8xf32>, vector<1x8x8xf32>, vector<1x8x8xf32>, vector<1x8x8xf32>, vector<1x8x8xf32> -> vector<12x8x8xf32>
    %cst_67 = arith.constant 0.144337565 : f32
    %83 = vector.broadcast %cst_67 : f32 to vector<12x8x8xf32>
    %84 = arith.mulf %82, %83 : vector<12x8x8xf32>
    %c0_68 = arith.constant 0 : index
    %c0_69 = arith.constant 0 : index
    %85 = vector.load %arg2[%c0_68, %c0_69] : memref<8x8xf32, #tpu.memory_space<vmem>>, vector<8x8xf32>
    %86 = vector.shape_cast %85 : vector<8x8xf32> to vector<1x8x8xf32>
    %87 = vector.broadcast %86 : vector<1x8x8xf32> to vector<12x8x8xf32>
    %88 = arith.addf %84, %87 : vector<12x8x8xf32>
    %cst_70 = arith.constant dense<0xFF800000> : vector<12x8xf32>
    %89 = vector.multi_reduction <maximumf>, %88, %cst_70 [2] : vector<12x8x8xf32> to vector<12x8xf32>
    %90 = vector.shape_cast %89 : vector<12x8xf32> to vector<12x8x1xf32>
    %91 = vector.broadcast %90 : vector<12x8x1xf32> to vector<12x8x8xf32>
    %92 = arith.subf %88, %91 : vector<12x8x8xf32>
    %93 = math.exp %92 : vector<12x8x8xf32>
    %cst_71 = arith.constant dense<0.000000e+00> : vector<12x8xf32>
    %94 = vector.multi_reduction <add>, %93, %cst_71 [2] : vector<12x8x8xf32> to vector<12x8xf32>
    %95 = vector.shape_cast %94 : vector<12x8xf32> to vector<12x8x1xf32>
    %96 = tpu.reciprocal %95 {approx = true} : vector<12x8x1xf32> -> vector<12x8x1xf32>
    %97 = vector.broadcast %96 : vector<12x8x1xf32> to vector<12x8x8xf32>
    %98 = arith.mulf %93, %97 : vector<12x8x8xf32>
    %c0_72 = arith.constant 0 : index
    %c96 = arith.constant 96 : index
    %99 = vector.load %arg18[%c0_72, %c96] : memref<16x144xf32, #tpu.memory_space<vmem>>, vector<8x8xf32>
    %100 = vector.extract_strided_slice %98 {offsets = [0, 0, 0], sizes = [1, 8, 8], strides = [1, 1, 1]} : vector<12x8x8xf32> to vector<1x8x8xf32>
    %101 = vector.shape_cast %100 : vector<1x8x8xf32> to vector<8x8xf32>
    %cst_73 = arith.constant dense<0.000000e+00> : vector<8x8xf32>
    %102 = tpu.matmul %101, %99, %cst_73 {dimension_numbers = #tpu.dot_dimension_numbers<[1], [0], [0], [1], [0, 0, 1, 1], [], []>} : vector<8x8xf32>, vector<8x8xf32>, vector<8x8xf32> -> vector<8x8xf32>
    %c0_74 = arith.constant 0 : index
    %c0_75 = arith.constant 0 : index
    %103 = vector.load %arg19[%c0_74, %c0_75] : memref<16x48xf32, #tpu.memory_space<vmem>>, vector<8x8xf32>
    tpu.vector_store %arg19[%c0_74, %c0_75], %102 {strides = array<i32>} : memref<16x48xf32, #tpu.memory_space<vmem>>, vector<8x8xf32>,
    %c0_76 = arith.constant 0 : index
    %c104 = arith.constant 104 : index
    %104 = vector.load %arg18[%c0_76, %c104] : memref<16x144xf32, #tpu.memory_space<vmem>>, vector<8x8xf32>
    %105 = vector.extract_strided_slice %98 {offsets = [1, 0, 0], sizes = [1, 8, 8], strides = [1, 1, 1]} : vector<12x8x8xf32> to vector<1x8x8xf32>
    %106 = vector.shape_cast %105 : vector<1x8x8xf32> to vector<8x8xf32>
    %cst_77 = arith.constant dense<0.000000e+00> : vector<8x8xf32>
    %107 = tpu.matmul %106, %104, %cst_77 {dimension_numbers = #tpu.dot_dimension_numbers<[1], [0], [0], [1], [0, 0, 1, 1], [], []>} : vector<8x8xf32>, vector<8x8xf32>, vector<8x8xf32> -> vector<8x8xf32>
    %c0_78 = arith.constant 0 : index
    %c8_79 = arith.constant 8 : index
    %108 = vector.load %arg19[%c0_78, %c8_79] : memref<16x48xf32, #tpu.memory_space<vmem>>, vector<8x8xf32>
    tpu.vector_store %arg19[%c0_78, %c8_79], %107 {strides = array<i32>} : memref<16x48xf32, #tpu.memory_space<vmem>>, vector<8x8xf32>,
    %c0_80 = arith.constant 0 : index
    %c112 = arith.constant 112 : index
    %109 = vector.load %arg18[%c0_80, %c112] : memref<16x144xf32, #tpu.memory_space<vmem>>, vector<8x8xf32>
    %110 = vector.extract_strided_slice %98 {offsets = [2, 0, 0], sizes = [1, 8, 8], strides = [1, 1, 1]} : vector<12x8x8xf32> to vector<1x8x8xf32>
    %111 = vector.shape_cast %110 : vector<1x8x8xf32> to vector<8x8xf32>
    %cst_81 = arith.constant dense<0.000000e+00> : vector<8x8xf32>
    %112 = tpu.matmul %111, %109, %cst_81 {dimension_numbers = #tpu.dot_dimension_numbers<[1], [0], [0], [1], [0, 0, 1, 1], [], []>} : vector<8x8xf32>, vector<8x8xf32>, vector<8x8xf32> -> vector<8x8xf32>
    %c0_82 = arith.constant 0 : index
    %c16_83 = arith.constant 16 : index
    %113 = vector.load %arg19[%c0_82, %c16_83] : memref<16x48xf32, #tpu.memory_space<vmem>>, vector<8x8xf32>
    tpu.vector_store %arg19[%c0_82, %c16_83], %112 {strides = array<i32>} : memref<16x48xf32, #tpu.memory_space<vmem>>, vector<8x8xf32>,
    %c0_84 = arith.constant 0 : index
    %c120 = arith.constant 120 : index
    %114 = vector.load %arg18[%c0_84, %c120] : memref<16x144xf32, #tpu.memory_space<vmem>>, vector<8x8xf32>
    %115 = vector.extract_strided_slice %98 {offsets = [3, 0, 0], sizes = [1, 8, 8], strides = [1, 1, 1]} : vector<12x8x8xf32> to vector<1x8x8xf32>
    %116 = vector.shape_cast %115 : vector<1x8x8xf32> to vector<8x8xf32>
    %cst_85 = arith.constant dense<0.000000e+00> : vector<8x8xf32>
    %117 = tpu.matmul %116, %114, %cst_85 {dimension_numbers = #tpu.dot_dimension_numbers<[1], [0], [0], [1], [0, 0, 1, 1], [], []>} : vector<8x8xf32>, vector<8x8xf32>, vector<8x8xf32> -> vector<8x8xf32>
    %c0_86 = arith.constant 0 : index
    %c24_87 = arith.constant 24 : index
    %118 = vector.load %arg19[%c0_86, %c24_87] : memref<16x48xf32, #tpu.memory_space<vmem>>, vector<8x8xf32>
    tpu.vector_store %arg19[%c0_86, %c24_87], %117 {strides = array<i32>} : memref<16x48xf32, #tpu.memory_space<vmem>>, vector<8x8xf32>,
    %c0_88 = arith.constant 0 : index
    %c128 = arith.constant 128 : index
    %119 = vector.load %arg18[%c0_88, %c128] : memref<16x144xf32, #tpu.memory_space<vmem>>, vector<8x8xf32>
    %120 = vector.extract_strided_slice %98 {offsets = [4, 0, 0], sizes = [1, 8, 8], strides = [1, 1, 1]} : vector<12x8x8xf32> to vector<1x8x8xf32>
    %121 = vector.shape_cast %120 : vector<1x8x8xf32> to vector<8x8xf32>
    %cst_89 = arith.constant dense<0.000000e+00> : vector<8x8xf32>
    %122 = tpu.matmul %121, %119, %cst_89 {dimension_numbers = #tpu.dot_dimension_numbers<[1], [0], [0], [1], [0, 0, 1, 1], [], []>} : vector<8x8xf32>, vector<8x8xf32>, vector<8x8xf32> -> vector<8x8xf32>
    %c0_90 = arith.constant 0 : index
    %c32_91 = arith.constant 32 : index
    %123 = vector.load %arg19[%c0_90, %c32_91] : memref<16x48xf32, #tpu.memory_space<vmem>>, vector<8x8xf32>
    tpu.vector_store %arg19[%c0_90, %c32_91], %122 {strides = array<i32>} : memref<16x48xf32, #tpu.memory_space<vmem>>, vector<8x8xf32>,
    %c0_92 = arith.constant 0 : index
    %c136 = arith.constant 136 : index
    %124 = vector.load %arg18[%c0_92, %c136] : memref<16x144xf32, #tpu.memory_space<vmem>>, vector<8x8xf32>
    %125 = vector.extract_strided_slice %98 {offsets = [5, 0, 0], sizes = [1, 8, 8], strides = [1, 1, 1]} : vector<12x8x8xf32> to vector<1x8x8xf32>
    %126 = vector.shape_cast %125 : vector<1x8x8xf32> to vector<8x8xf32>
    %cst_93 = arith.constant dense<0.000000e+00> : vector<8x8xf32>
    %127 = tpu.matmul %126, %124, %cst_93 {dimension_numbers = #tpu.dot_dimension_numbers<[1], [0], [0], [1], [0, 0, 1, 1], [], []>} : vector<8x8xf32>, vector<8x8xf32>, vector<8x8xf32> -> vector<8x8xf32>
    %c0_94 = arith.constant 0 : index
    %c40_95 = arith.constant 40 : index
    %128 = vector.load %arg19[%c0_94, %c40_95] : memref<16x48xf32, #tpu.memory_space<vmem>>, vector<8x8xf32>
    tpu.vector_store %arg19[%c0_94, %c40_95], %127 {strides = array<i32>} : memref<16x48xf32, #tpu.memory_space<vmem>>, vector<8x8xf32>,
    %c8_96 = arith.constant 8 : index
    %c96_97 = arith.constant 96 : index
    %129 = vector.load %arg18[%c8_96, %c96_97] : memref<16x144xf32, #tpu.memory_space<vmem>>, vector<8x8xf32>
    %130 = vector.extract_strided_slice %98 {offsets = [6, 0, 0], sizes = [1, 8, 8], strides = [1, 1, 1]} : vector<12x8x8xf32> to vector<1x8x8xf32>
    %131 = vector.shape_cast %130 : vector<1x8x8xf32> to vector<8x8xf32>
    %cst_98 = arith.constant dense<0.000000e+00> : vector<8x8xf32>
    %132 = tpu.matmul %131, %129, %cst_98 {dimension_numbers = #tpu.dot_dimension_numbers<[1], [0], [0], [1], [0, 0, 1, 1], [], []>} : vector<8x8xf32>, vector<8x8xf32>, vector<8x8xf32> -> vector<8x8xf32>
    %c8_99 = arith.constant 8 : index
    %c0_100 = arith.constant 0 : index
    %133 = vector.load %arg19[%c8_99, %c0_100] : memref<16x48xf32, #tpu.memory_space<vmem>>, vector<8x8xf32>
    tpu.vector_store %arg19[%c8_99, %c0_100], %132 {strides = array<i32>} : memref<16x48xf32, #tpu.memory_space<vmem>>, vector<8x8xf32>,
    %c8_101 = arith.constant 8 : index
    %c104_102 = arith.constant 104 : index
    %134 = vector.load %arg18[%c8_101, %c104_102] : memref<16x144xf32, #tpu.memory_space<vmem>>, vector<8x8xf32>
    %135 = vector.extract_strided_slice %98 {offsets = [7, 0, 0], sizes = [1, 8, 8], strides = [1, 1, 1]} : vector<12x8x8xf32> to vector<1x8x8xf32>
    %136 = vector.shape_cast %135 : vector<1x8x8xf32> to vector<8x8xf32>
    %cst_103 = arith.constant dense<0.000000e+00> : vector<8x8xf32>
    %137 = tpu.matmul %136, %134, %cst_103 {dimension_numbers = #tpu.dot_dimension_numbers<[1], [0], [0], [1], [0, 0, 1, 1], [], []>} : vector<8x8xf32>, vector<8x8xf32>, vector<8x8xf32> -> vector<8x8xf32>
    %c8_104 = arith.constant 8 : index
    %c8_105 = arith.constant 8 : index
    %138 = vector.load %arg19[%c8_104, %c8_105] : memref<16x48xf32, #tpu.memory_space<vmem>>, vector<8x8xf32>
    tpu.vector_store %arg19[%c8_104, %c8_105], %137 {strides = array<i32>} : memref<16x48xf32, #tpu.memory_space<vmem>>, vector<8x8xf32>,
    %c8_106 = arith.constant 8 : index
    %c112_107 = arith.constant 112 : index
    %139 = vector.load %arg18[%c8_106, %c112_107] : memref<16x144xf32, #tpu.memory_space<vmem>>, vector<8x8xf32>
    %140 = vector.extract_strided_slice %98 {offsets = [8, 0, 0], sizes = [1, 8, 8], strides = [1, 1, 1]} : vector<12x8x8xf32> to vector<1x8x8xf32>
    %141 = vector.shape_cast %140 : vector<1x8x8xf32> to vector<8x8xf32>
    %cst_108 = arith.constant dense<0.000000e+00> : vector<8x8xf32>
    %142 = tpu.matmul %141, %139, %cst_108 {dimension_numbers = #tpu.dot_dimension_numbers<[1], [0], [0], [1], [0, 0, 1, 1], [], []>} : vector<8x8xf32>, vector<8x8xf32>, vector<8x8xf32> -> vector<8x8xf32>
    %c8_109 = arith.constant 8 : index
    %c16_110 = arith.constant 16 : index
    %143 = vector.load %arg19[%c8_109, %c16_110] : memref<16x48xf32, #tpu.memory_space<vmem>>, vector<8x8xf32>
    tpu.vector_store %arg19[%c8_109, %c16_110], %142 {strides = array<i32>} : memref<16x48xf32, #tpu.memory_space<vmem>>, vector<8x8xf32>,
    %c8_111 = arith.constant 8 : index
    %c120_112 = arith.constant 120 : index
    %144 = vector.load %arg18[%c8_111, %c120_112] : memref<16x144xf32, #tpu.memory_space<vmem>>, vector<8x8xf32>
    %145 = vector.extract_strided_slice %98 {offsets = [9, 0, 0], sizes = [1, 8, 8], strides = [1, 1, 1]} : vector<12x8x8xf32> to vector<1x8x8xf32>
    %146 = vector.shape_cast %145 : vector<1x8x8xf32> to vector<8x8xf32>
    %cst_113 = arith.constant dense<0.000000e+00> : vector<8x8xf32>
    %147 = tpu.matmul %146, %144, %cst_113 {dimension_numbers = #tpu.dot_dimension_numbers<[1], [0], [0], [1], [0, 0, 1, 1], [], []>} : vector<8x8xf32>, vector<8x8xf32>, vector<8x8xf32> -> vector<8x8xf32>
    %c8_114 = arith.constant 8 : index
    %c24_115 = arith.constant 24 : index
    %148 = vector.load %arg19[%c8_114, %c24_115] : memref<16x48xf32, #tpu.memory_space<vmem>>, vector<8x8xf32>
    tpu.vector_store %arg19[%c8_114, %c24_115], %147 {strides = array<i32>} : memref<16x48xf32, #tpu.memory_space<vmem>>, vector<8x8xf32>,
    %c8_116 = arith.constant 8 : index
    %c128_117 = arith.constant 128 : index
    %149 = vector.load %arg18[%c8_116, %c128_117] : memref<16x144xf32, #tpu.memory_space<vmem>>, vector<8x8xf32>
    %150 = vector.extract_strided_slice %98 {offsets = [10, 0, 0], sizes = [1, 8, 8], strides = [1, 1, 1]} : vector<12x8x8xf32> to vector<1x8x8xf32>
    %151 = vector.shape_cast %150 : vector<1x8x8xf32> to vector<8x8xf32>
    %cst_118 = arith.constant dense<0.000000e+00> : vector<8x8xf32>
    %152 = tpu.matmul %151, %149, %cst_118 {dimension_numbers = #tpu.dot_dimension_numbers<[1], [0], [0], [1], [0, 0, 1, 1], [], []>} : vector<8x8xf32>, vector<8x8xf32>, vector<8x8xf32> -> vector<8x8xf32>
    %c8_119 = arith.constant 8 : index
    %c32_120 = arith.constant 32 : index
    %153 = vector.load %arg19[%c8_119, %c32_120] : memref<16x48xf32, #tpu.memory_space<vmem>>, vector<8x8xf32>
    tpu.vector_store %arg19[%c8_119, %c32_120], %152 {strides = array<i32>} : memref<16x48xf32, #tpu.memory_space<vmem>>, vector<8x8xf32>,
    %c8_121 = arith.constant 8 : index
    %c136_122 = arith.constant 136 : index
    %154 = vector.load %arg18[%c8_121, %c136_122] : memref<16x144xf32, #tpu.memory_space<vmem>>, vector<8x8xf32>
    %155 = vector.extract_strided_slice %98 {offsets = [11, 0, 0], sizes = [1, 8, 8], strides = [1, 1, 1]} : vector<12x8x8xf32> to vector<1x8x8xf32>
    %156 = vector.shape_cast %155 : vector<1x8x8xf32> to vector<8x8xf32>
    %cst_123 = arith.constant dense<0.000000e+00> : vector<8x8xf32>
    %157 = tpu.matmul %156, %154, %cst_123 {dimension_numbers = #tpu.dot_dimension_numbers<[1], [0], [0], [1], [0, 0, 1, 1], [], []>} : vector<8x8xf32>, vector<8x8xf32>, vector<8x8xf32> -> vector<8x8xf32>
    %c8_124 = arith.constant 8 : index
    %c40_125 = arith.constant 40 : index
    %158 = vector.load %arg19[%c8_124, %c40_125] : memref<16x48xf32, #tpu.memory_space<vmem>>, vector<8x8xf32>
    tpu.vector_store %arg19[%c8_124, %c40_125], %157 {strides = array<i32>} : memref<16x48xf32, #tpu.memory_space<vmem>>, vector<8x8xf32>,
    %c0_126 = arith.constant 0 : index
    %c0_127 = arith.constant 0 : index
    %159 = vector.load %arg19[%c0_126, %c0_127] : memref<16x48xf32, #tpu.memory_space<vmem>>, vector<16x48xf32>
    %c0_128 = arith.constant 0 : index
    %c0_129 = arith.constant 0 : index
    %c0_130 = arith.constant 0 : index
    %160 = vector.load %arg6[%c0_128, %c0_129, %c0_130] : memref<1x48x48xf32, #tpu.memory_space<vmem>>, vector<1x48x48xf32>
    %161 = vector.shape_cast %160 : vector<1x48x48xf32> to vector<48x48xf32>
    %cst_131 = arith.constant dense<0.000000e+00> : vector<16x48xf32>
    %162 = tpu.matmul %159, %161, %cst_131 {dimension_numbers = #tpu.dot_dimension_numbers<[1], [0], [0], [1], [0, 0, 1, 1], [], []>} : vector<16x48xf32>, vector<48x48xf32>, vector<16x48xf32> -> vector<16x48xf32>
    %163 = arith.addf %3, %162 : vector<16x48xf32>
    %c0_132 = arith.constant 0 : index
    %c0_133 = arith.constant 0 : index
    %c0_134 = arith.constant 0 : index
    %164 = vector.load %arg7[%c0_132, %c0_133, %c0_134] : memref<1x1x48xf32, #tpu.memory_space<vmem>>, vector<1x1x48xf32>
    %165 = vector.shape_cast %164 : vector<1x1x48xf32> to vector<1x48xf32>
    %166 = vector.broadcast %165 : vector<1x48xf32> to vector<16x48xf32>
    %167 = arith.addf %163, %166 : vector<16x48xf32>
    %c0_135 = arith.constant 0 : index
    %c0_136 = arith.constant 0 : index
    %c0_137 = arith.constant 0 : index
    %168 = vector.load %arg8[%c0_135, %c0_136, %c0_137] : memref<1x1x48xf32, #tpu.memory_space<vmem>>, vector<1x1x48xf32>
    %169 = vector.shape_cast %168 : vector<1x1x48xf32> to vector<1x48xf32>
    %c0_138 = arith.constant 0 : index
    %c0_139 = arith.constant 0 : index
    %c0_140 = arith.constant 0 : index
    %170 = vector.load %arg9[%c0_138, %c0_139, %c0_140] : memref<1x1x48xf32, #tpu.memory_space<vmem>>, vector<1x1x48xf32>
    %171 = vector.shape_cast %170 : vector<1x1x48xf32> to vector<1x48xf32>
    %cst_141 = arith.constant dense<0.000000e+00> : vector<16xf32>
    %172 = vector.multi_reduction <add>, %167, %cst_141 [1] : vector<16x48xf32> to vector<16xf32>
    %173 = vector.shape_cast %172 : vector<16xf32> to vector<16x1xf32>
    %cst_142 = arith.constant 4.800000e+01 : f32
    %174 = vector.broadcast %cst_142 : f32 to vector<16x1xf32>
    %175 = arith.divf %173, %174 : vector<16x1xf32>
    %176 = vector.broadcast %175 : vector<16x1xf32> to vector<16x48xf32>
    %177 = arith.subf %167, %176 : vector<16x48xf32>
    %178 = arith.mulf %177, %177 : vector<16x48xf32>
    %cst_143 = arith.constant dense<0.000000e+00> : vector<16xf32>
    %179 = vector.multi_reduction <add>, %178, %cst_143 [1] : vector<16x48xf32> to vector<16xf32>
    %180 = vector.shape_cast %179 : vector<16xf32> to vector<16x1xf32>
    %cst_144 = arith.constant 4.800000e+01 : f32
    %181 = vector.broadcast %cst_144 : f32 to vector<16x1xf32>
    %182 = arith.divf %180, %181 : vector<16x1xf32>
    %183 = vector.broadcast %175 : vector<16x1xf32> to vector<16x48xf32>
    %184 = arith.subf %167, %183 : vector<16x48xf32>
    %cst_145 = arith.constant 9.99999974E-6 : f32
    %185 = vector.broadcast %cst_145 : f32 to vector<16x1xf32>
    %186 = arith.addf %182, %185 : vector<16x1xf32>
    %187 = math.rsqrt %186 : vector<16x1xf32>
    %188 = vector.broadcast %187 : vector<16x1xf32> to vector<16x48xf32>
    %189 = arith.mulf %184, %188 : vector<16x48xf32>
    %190 = vector.broadcast %169 : vector<1x48xf32> to vector<16x48xf32>
    %191 = arith.mulf %189, %190 : vector<16x48xf32>
    %192 = vector.broadcast %171 : vector<1x48xf32> to vector<16x48xf32>
    %193 = arith.addf %191, %192 : vector<16x48xf32>
    %c0_146 = arith.constant 0 : index
    %c0_147 = arith.constant 0 : index
    %c0_148 = arith.constant 0 : index
    %194 = vector.load %arg10[%c0_146, %c0_147, %c0_148] : memref<1x48x192xf32, #tpu.memory_space<vmem>>, vector<1x48x192xf32>
    %195 = vector.shape_cast %194 : vector<1x48x192xf32> to vector<48x192xf32>
    %cst_149 = arith.constant dense<0.000000e+00> : vector<16x192xf32>
    %196 = tpu.matmul %193, %195, %cst_149 {dimension_numbers = #tpu.dot_dimension_numbers<[1], [0], [0], [1], [0, 0, 1, 1], [], []>} : vector<16x48xf32>, vector<48x192xf32>, vector<16x192xf32> -> vector<16x192xf32>
    %c0_150 = arith.constant 0 : index
    %c0_151 = arith.constant 0 : index
    %c0_152 = arith.constant 0 : index
    %197 = vector.load %arg11[%c0_150, %c0_151, %c0_152] : memref<1x1x192xf32, #tpu.memory_space<vmem>>, vector<1x1x192xf32>
    %198 = vector.shape_cast %197 : vector<1x1x192xf32> to vector<1x192xf32>
    %199 = vector.broadcast %198 : vector<1x192xf32> to vector<16x192xf32>
    %200 = arith.addf %196, %199 : vector<16x192xf32>
    %cst_153 = arith.constant 0.000000e+00 : f32
    %201 = vector.broadcast %cst_153 : f32 to vector<16x192xf32>
    %202 = arith.maximumf %200, %201 : vector<16x192xf32>
    %c0_154 = arith.constant 0 : index
    %c0_155 = arith.constant 0 : index
    %c0_156 = arith.constant 0 : index
    %203 = vector.load %arg12[%c0_154, %c0_155, %c0_156] : memref<1x192x48xf32, #tpu.memory_space<vmem>>, vector<1x192x48xf32>
    %204 = vector.shape_cast %203 : vector<1x192x48xf32> to vector<192x48xf32>
    %cst_157 = arith.constant dense<0.000000e+00> : vector<16x48xf32>
    %205 = tpu.matmul %202, %204, %cst_157 {dimension_numbers = #tpu.dot_dimension_numbers<[1], [0], [0], [1], [0, 0, 1, 1], [], []>} : vector<16x192xf32>, vector<192x48xf32>, vector<16x48xf32> -> vector<16x48xf32>
    %206 = arith.addf %167, %205 : vector<16x48xf32>
    %c0_158 = arith.constant 0 : index
    %c0_159 = arith.constant 0 : index
    %c0_160 = arith.constant 0 : index
    %207 = vector.load %arg13[%c0_158, %c0_159, %c0_160] : memref<1x1x48xf32, #tpu.memory_space<vmem>>, vector<1x1x48xf32>
    %208 = vector.shape_cast %207 : vector<1x1x48xf32> to vector<1x48xf32>
    %209 = vector.broadcast %208 : vector<1x48xf32> to vector<16x48xf32>
    %210 = arith.addf %206, %209 : vector<16x48xf32>
    %c0_161 = arith.constant 0 : index
    %c0_162 = arith.constant 0 : index
    %211 = vector.load %arg17[%c0_161, %c0_162] : memref<16x48xf32, #tpu.memory_space<vmem>>, vector<16x48xf32>
    tpu.vector_store %arg17[%c0_161, %c0_162], %210 {strides = array<i32>} : memref<16x48xf32, #tpu.memory_space<vmem>>, vector<16x48xf32>,
    %c1_i32 = arith.constant 1 : i32
    %212 = arith.cmpi eq, %arg0, %c1_i32 : i32
    %213 = arith.extui %212 : i1 to i32
    %c0_i32_163 = arith.constant 0 : i32
    %214 = arith.cmpi ne, %213, %c0_i32_163 : i32
    scf.if %214 {
      %c0_164 = arith.constant 0 : index
      %c0_165 = arith.constant 0 : index
      %215 = vector.load %arg14[%c0_164, %c0_165] : memref<48x128xf32, #tpu.memory_space<vmem>>, vector<48x128xf32>
      %cst_166 = arith.constant dense<0.000000e+00> : vector<16x128xf32>
      %216 = tpu.matmul %210, %215, %cst_166 {dimension_numbers = #tpu.dot_dimension_numbers<[1], [0], [0], [1], [0, 0, 1, 1], [], []>} : vector<16x48xf32>, vector<48x128xf32>, vector<16x128xf32> -> vector<16x128xf32>
      %c0_167 = arith.constant 0 : index
      %c0_168 = arith.constant 0 : index
      %217 = vector.load %arg15[%c0_167, %c0_168] : memref<1x128xf32, #tpu.memory_space<vmem>>, vector<1x128xf32>
      %218 = vector.broadcast %217 : vector<1x128xf32> to vector<16x128xf32>
      %219 = arith.addf %216, %218 : vector<16x128xf32>
      %c0_169 = arith.constant 0 : index
      %c0_170 = arith.constant 0 : index
      %220 = vector.load %arg16[%c0_169, %c0_170] : memref<16x128xf32, #tpu.memory_space<vmem>>, vector<16x128xf32>
      tpu.vector_store %arg16[%c0_169, %c0_170], %219 {strides = array<i32>} : memref<16x128xf32, #tpu.memory_space<vmem>>, vector<16x128xf32>,
    } else {
    }
    return
  }
  func.func @transform_0(%arg0: i32) -> (i32, i32) {
    %c0_i32 = arith.constant 0 : i32
    %c0_i32_0 = arith.constant 0 : i32
    %c0_i32_1 = arith.constant 0 : i32
    return %c0_i32, %c0_i32_0 : i32, i32
  }
  func.func @transform_1(%arg0: i32) -> (i32, i32) {
    %c0_i32 = arith.constant 0 : i32
    %c0_i32_0 = arith.constant 0 : i32
    %c0_i32_1 = arith.constant 0 : i32
    return %c0_i32, %c0_i32_0 : i32, i32
  }
  func.func @transform_2(%arg0: i32) -> (i32, i32, i32) {
    %c0_i32 = arith.constant 0 : i32
    %c0_i32_0 = arith.constant 0 : i32
    %c0_i32_1 = arith.constant 0 : i32
    return %arg0, %c0_i32, %c0_i32_0 : i32, i32, i32
  }
  func.func @transform_3(%arg0: i32) -> (i32, i32, i32) {
    %c0_i32 = arith.constant 0 : i32
    %c0_i32_0 = arith.constant 0 : i32
    %c0_i32_1 = arith.constant 0 : i32
    return %arg0, %c0_i32, %c0_i32_0 : i32, i32, i32
  }
  func.func @transform_4(%arg0: i32) -> (i32, i32, i32) {
    %c0_i32 = arith.constant 0 : i32
    %c0_i32_0 = arith.constant 0 : i32
    %c0_i32_1 = arith.constant 0 : i32
    return %arg0, %c0_i32, %c0_i32_0 : i32, i32, i32
  }
  func.func @transform_5(%arg0: i32) -> (i32, i32, i32) {
    %c0_i32 = arith.constant 0 : i32
    %c0_i32_0 = arith.constant 0 : i32
    %c0_i32_1 = arith.constant 0 : i32
    return %arg0, %c0_i32, %c0_i32_0 : i32, i32, i32
  }
  func.func @transform_6(%arg0: i32) -> (i32, i32, i32) {
    %c0_i32 = arith.constant 0 : i32
    %c0_i32_0 = arith.constant 0 : i32
    %c0_i32_1 = arith.constant 0 : i32
    return %arg0, %c0_i32, %c0_i32_0 : i32, i32, i32
  }
  func.func @transform_7(%arg0: i32) -> (i32, i32, i32) {
    %c0_i32 = arith.constant 0 : i32
    %c0_i32_0 = arith.constant 0 : i32
    %c0_i32_1 = arith.constant 0 : i32
    return %arg0, %c0_i32, %c0_i32_0 : i32, i32, i32
  }
  func.func @transform_8(%arg0: i32) -> (i32, i32, i32) {
    %c0_i32 = arith.constant 0 : i32
    %c0_i32_0 = arith.constant 0 : i32
    %c0_i32_1 = arith.constant 0 : i32
    return %arg0, %c0_i32, %c0_i32_0 : i32, i32, i32
  }
  func.func @transform_9(%arg0: i32) -> (i32, i32, i32) {
    %c0_i32 = arith.constant 0 : i32
    %c0_i32_0 = arith.constant 0 : i32
    %c0_i32_1 = arith.constant 0 : i32
    return %arg0, %c0_i32, %c0_i32_0 : i32, i32, i32
  }
  func.func @transform_10(%arg0: i32) -> (i32, i32, i32) {
    %c0_i32 = arith.constant 0 : i32
    %c0_i32_0 = arith.constant 0 : i32
    %c0_i32_1 = arith.constant 0 : i32
    return %arg0, %c0_i32, %c0_i32_0 : i32, i32, i32
  }
  func.func @transform_11(%arg0: i32) -> (i32, i32, i32) {
    %c0_i32 = arith.constant 0 : i32
    %c0_i32_0 = arith.constant 0 : i32
    %c0_i32_1 = arith.constant 0 : i32
    return %arg0, %c0_i32, %c0_i32_0 : i32, i32, i32
  }
  func.func @transform_12(%arg0: i32) -> (i32, i32, i32) {
    %c0_i32 = arith.constant 0 : i32
    %c0_i32_0 = arith.constant 0 : i32
    %c0_i32_1 = arith.constant 0 : i32
    return %arg0, %c0_i32, %c0_i32_0 : i32, i32, i32
  }
  func.func @transform_13(%arg0: i32) -> (i32, i32) {
    %c0_i32 = arith.constant 0 : i32
    %c0_i32_0 = arith.constant 0 : i32
    %c0_i32_1 = arith.constant 0 : i32
    return %c0_i32, %c0_i32_0 : i32, i32
  }
  func.func @transform_14(%arg0: i32) -> (i32, i32) {
    %c0_i32 = arith.constant 0 : i32
    %c0_i32_0 = arith.constant 0 : i32
    %c0_i32_1 = arith.constant 0 : i32
    return %c0_i32, %c0_i32_0 : i32, i32
  }
  func.func @transform_15(%arg0: i32) -> (i32, i32) {
    %c0_i32 = arith.constant 0 : i32
    %c0_i32_0 = arith.constant 0 : i32
    %c0_i32_1 = arith.constant 0 : i32
    return %c0_i32, %c0_i32_0 : i32, i32
  }
}

</mosaic_0001>

<bundles_post_ra>
// kernel: tpu_custom_call.1
= control target key start
LH: loop header
LB: loop body
LE: loop exit
PB: predicated region body
PF: predicated region fallthrough
CT: control target
= control target key end

     0   :  { %s4597_s0 = inlined_call_operand.vmem [shape: f32[16,48], index: 0, kind: input, shape index: {}]   ;;  %s4598_s1 = inlined_call_operand.vmem [shape: f32[8,8], index: 1, kind: input, shape index: {}]   ;;  %s4599_s2 = inlined_call_operand.vmem [shape: f32[2,1,48], index: 2, kind: input, shape index: {}]   ;;  %s4600_s3 = inlined_call_operand.vmem [shape: f32[2,1,48], index: 3, kind: input, shape index: {}]   ;;  %s4601_s4 = inlined_call_operand.vmem [shape: f32[2,48,144], index: 4, kind: input, shape index: {}]   ;;  %s4602_s5 = inlined_call_operand.vmem [shape: f32[2,48,48], index: 5, kind: input, shape index: {}]   ;;  %s4603_s6 = inlined_call_operand.vmem [shape: f32[2,1,48], index: 6, kind: input, shape index: {}]   ;;  %s4604_s7 = inlined_call_operand.vmem [shape: f32[2,1,48], index: 7, kind: input, shape index: {}]   ;;  %s4605_s8 = inlined_call_operand.vmem [shape: f32[2,1,48], index: 8, kind: input, shape index: {}]   ;;  %s4606_s9 = inlined_call_operand.vmem [shape: f32[2,48,192], index: 9, kind: input, shape index: {}]   ;;  %s4607_s10 = inlined_call_operand.vmem [shape: f32[2,1,192], index: 10, kind: input, shape index: {}]   ;;  %s4608_s11 = inlined_call_operand.vmem [shape: f32[2,192,48], index: 11, kind: input, shape index: {}]   ;;  %s4609_s12 = inlined_call_operand.vmem [shape: f32[2,1,48], index: 12, kind: input, shape index: {}]   ;;  %s4610_s13 = inlined_call_operand.vmem [shape: f32[48,128], index: 13, kind: input, shape index: {}]   ;;  %s4611_s14 = inlined_call_operand.vmem [shape: f32[1,128], index: 14, kind: input, shape index: {}]   ;;  %s4612_s15 = inlined_call_operand.hbm [shape: f32[16,128], index: 15, kind: output, shape index: {}]  }
   0x1   :  { %4615 = sst [smem:[#allocation9_spill]] %s4598_s1 }
   0x2   :  { %4616 = sst [smem:[#allocation10_spill]] %s4601_s4 }
   0x3   :  { %4617 = sst [smem:[#allocation11_spill]] %s4610_s13 }
   0x4   :  { %4618 = sst [smem:[#allocation12_spill]] %s4611_s14 }
   0x5   :  { %4619 = sst [smem:[#allocation13_spill]] %s4612_s15 }
   0x6   :  { %20 = vsyncpa [#allocation6], 0  ;;  %s4011_s18 = smov 0  }
   0x7 LB: > { %4620 = sst [smem:[#allocation8_spill]] %s3910_s18  ;;  %s4017_s19 = sadd.s32 4294967295, %s3910_s18   ;;  %s3910_s18 = sphi %s4011_s18, %s26_s18  }
   0x8   : > { %p3503_p0 = scmp.ge.s32.totalorder %s3910_s18, 1  ;;  %p520_p1 = scmp.lt.s32.totalorder %s3910_s18, 3 }
   0xa   : > { %p521_p2 = pnand %p3503_p0, %p520_p1 }
   0xb   : > { %p600_p3 = scmp.lt.s32.totalorder (!%p521_p2), %s4017_s19, 1  ;;  %s4621_s4 = sld [smem:[#allocation10_spill]] (!%p521_p2) }
   0xc   : > { %524 = sbr.rel (%p521_p2) target bundleno = 2716 (0xa9c), region = 80  ;;  %p3509_p4 = scmp.ne.s32.totalorder (!%p521_p2), %s4017_s19, 0 }
  0x11   : > { %s4023_s20 = scalar_select %p600_p3, %s4017_s19, 1 }
  0x13   : > { %s3782_s27 = smul.u32 96, %s4023_s20  ;;  %s3507_s17 = sshll.u32 %s4023_s20, 1 }
  0x14   : > { %s3783_s16 = smul.u32 48, %s4023_s20  ;;  %s4067_s18 = scalar_lea.vmem %s4607_s10, %s3507_s17 }
  0x15   : > { %s4046_s14 = scalar_lea.vmem %s4621_s4, %s3782_s27  ;;  %s4060_s30 = scalar_lea.vmem %s4606_s9, %s3782_s27 }
  0x16   : > { %s4055_s1 = scalar_lea.vmem %s4602_s5, %s3783_s16  ;;  %s3784_s21 = smul.u32 192, %s4023_s20 }
  0x17   : > { %s641_s23 = scalar_lea.vmem %s4609_s12, %s4023_s20  ;;  %645 = sbr.rel (%p3509_p4) target bundleno = 30 (0x1e), region = 84 }
  0x18   : > { %s4076_s16 = scalar_lea.vmem %s4608_s11, %s3784_s21 }
  0x1c   : > { %v646_v0 = vld [vmem:[%s4597_s0] sm:$0xff]  ;;  %vm648_vm0 = vcmask 392192   ;;  %v647_v1 = vld [vmem:[%s4597_s0 + $0x8] sm:$0xff] }
  0x1d   : > { %649 = vst.msk [vmem:[#allocation2] sm:$0xff] %vm648_vm0, %v646_v0  ;;  %650 = vst.msk [vmem:[#allocation2 + $0x8] sm:$0xff] %vm648_vm0, %v647_v1 }
  0x1e PF: > { %vm655_vm1 = vcmask 392192   ;;  %v710_v16 = vld [vmem:[%s4046_s14 + $0x58] sm:$0xff]  ;;  %v709_v17 = vld [vmem:[%s4046_s14 + $0x50] sm:$0xff]  ;;  %v708_v18 = vld [vmem:[%s4046_s14 + $0x48] sm:$0xff]  ;;  %v3912_v20 = vmov 0.0   ;;  %s4622_s29 = scalar_lea.vmem %s4599_s2, %s4023_s20  ;;  %s4623_s21 = scalar_lea.vmem %s4600_s3, %s4023_s20  ;;  %vm3913_vm2 = vmmov 0  }
  0x1f   : > { %737 = vmatprep.subr.mxu1 %v710_v16  ;;  %v707_v19 = vld [vmem:[%s4046_s14 + $0x40] sm:$0xff]  ;;  %781 = vmatprep.mubr.f32.mxu1 %v3912_v20  ;;  %v706_v21 = vld [vmem:[%s4046_s14 + $0x38] sm:$0xff]  ;;  %v705_v22 = vld [vmem:[%s4046_s14 + $0x30] sm:$0xff]  ;;  %vm795_vm3 = vcmask 130048   ;;  %s3914_s15 = smov 80   ;;  %s3915_s13 = smov 72  }
  0x20   : > { %738 = vmatpush1.msra.mxu1 %v709_v17  ;;  %3672 = vmatprep.subr.mxu0 %v3912_v20  ;;  %v704_v23 = vld [vmem:[%s4046_s14 + $0x28] sm:$0xff]  ;;  %v703_v24 = vld [vmem:[%s4046_s14 + $0x20] sm:$0xff]  ;;  %v702_v25 = vld [vmem:[%s4046_s14 + $0x18] sm:$0xff]  ;;  %s3916_s26 = smov 112   ;;  %s3917_s27 = smov 120   ;;  %vm803_vm4 = vcmask 64512  }
  0x21   : > { %739 = vmatprep.subr.mxu1 %v708_v18  ;;  %v701_v26 = vld [vmem:[%s4046_s14 + $0x10] sm:$0xff]  ;;  %v700_v27 = vld [vmem:[%s4046_s14 + $0x8] sm:$0xff]  ;;  %v699_v28 = vld [vmem:[%s4046_s14] sm:$0xff]  ;;  %3674 = vmatprep.mubr.msk.f32.mxu0 %vm3913_vm2, %v3912_v20  ;;  %s3918_s25 = smov 104   ;;  %s3919_s22 = smov 64   ;;  %vm2052_vm5 = vcmask 130112  }
  0x22   : > { %740 = vmatpush1.msra.mxu1 %v707_v19  ;;  %v3510_v36 = vld [vmem:[%s4622_s29] ss:$0 sm:$0xff]  ;;  %s3920_s28 = smov 96   ;;  %s3921_s4 = smov 56   ;;  %vm2136_vm6 = vcmask 195712   ;;  %vm2220_vm7 = vcmask 261312  }
  0x23   : > { %741 = vmatprep.subr.mxu1 %v706_v21  ;;  %v3511_v38 = vld [vmem:[%s4623_s21] ss:$0 sm:$0xff]  ;;  %s3922_s24 = smov 88   ;;  %s3923_s29 = smov 48   ;;  %vm2300_vm8 = vcmask 326912   ;;  %vm2384_vm9 = vcmask 392512  }
  0x24   : > { %v651_v2 = vld [vmem:[#allocation2] sm:$0xff]  ;;  %v652_v3 = vld [vmem:[#allocation2 + $0x8] sm:$0xff]  ;;  %742 = vmatpush1.msra.mxu1 %v705_v22  ;;  %s3924_s14 = smov 40   ;;  %s4627_s17 = scalar_lea.vmem %s4605_s8, %s4023_s20  ;;  %vm3155_vm10 = vcmask 523264  }
  0x25   : > { %v656_v4 = vsel %vm655_vm1, %v651_v2, 0.0  ;;  %v659_v5 = vsel %vm655_vm1, %v652_v3, 0.0  ;;  %743 = vmatprep.subr.mxu1 %v704_v23  ;;  %p3560_p5 = scmp.ne.s32.totalorder %s4017_s19, 1 }
  0x26   : > { %657 = vadd.xlane.f32.xlu0 %v656_v4  ;;  %744 = vmatpush1.msra.mxu1 %v703_v24 }
  0x27   : > { %745 = vmatprep.subr.mxu1 %v702_v25 }
  0x28   : > { %746 = vmatpush1.msra.mxu1 %v701_v26 }
  0x29   : > { %747 = vmatprep.subr.mxu1 %v700_v27 }
  0x2a   : > { %660 = vadd.xlane.f32.xlu0 %v659_v5  ;;  %748 = vmatpush1.msra.mxu1 %v699_v28 }
  0x2b   : > { %3632 = vmatprep.subr.mxu1 %v3912_v20 }
  0xaf   : > { %v658_v6 = vpop.xlane.xlu0 %657 }
  0xb0   : > { %v663_v7 = vmul.f32 0.020833334, %v658_v6 }
  0xb2   : > { %v665_v8 = vsub.f32 %v651_v2, %v663_v7 }
  0xb3   : > { %v661_v9 = vpop.xlane.xlu0 %660 }
  0xb4   : > { %v664_v10 = vmul.f32 0.020833334, %v661_v9  ;;  %v667_v11 = vmul.f32 %v665_v8, %v665_v8 }
  0xb6   : > { %v666_v12 = vsub.f32 %v652_v3, %v664_v10  ;;  %v669_v13 = vsel %vm655_vm1, %v667_v11, 0.0 }
  0xb7   : > { %670 = vadd.xlane.f32.xlu1 %v669_v13 }
  0xb8   : > { %v668_v14 = vmul.f32 %v666_v12, %v666_v12 }
  0xba   : > { %v672_v15 = vsel %vm655_vm1, %v668_v14, 0.0 }
  0xbb   : > { %673 = vadd.xlane.f32.xlu1 %v672_v15 }
 0x140   : > { %v671_v29 = vpop.xlane.xlu1 %670 }
 0x141   : > { %v675_v30 = vmul.f32 0.020833334, %v671_v29 }
 0x143   : > { %v677_v31 = vadd.f32 1e-05, %v675_v30 }
 0x144   : > { %v674_v32 = vpop.xlane.xlu1 %673 }
 0x145   : > { %3818 = vrsqrt.f32 %v677_v31  ;;  %v676_v33 = vmul.f32 0.020833334, %v674_v32 }
 0x147   : > { %v678_v34 = vadd.f32 1e-05, %v676_v33 }
 0x149   : > { %3820 = vrsqrt.f32 %v678_v34 }
 0x152   : > { %v3819_v35 = vpop.eup %3818 }
 0x153   : > { %v681_v37 = vmul.f32 %v3819_v35, %v665_v8 }
 0x155   : > { %v689_v39 = vmul.f32 %v3510_v36, %v681_v37 }
 0x156   : > { %v3821_v40 = vpop.eup %3820 }
 0x157   : > { %v697_v41 = vadd.f32 %v3511_v38, %v689_v39  ;;  %v682_v42 = vmul.f32 %v3821_v40, %v666_v12 }
 0x159   : > { %3512 = vmatmul.mubr.msk.f32.vlgmr.msra.gmra.mxu1 %vm655_vm1, %v697_v41  ;;  %v690_v43 = vmul.f32 %v3510_v36, %v682_v42 }
 0x15a   : > { %787 = vmatprep.mubr.f32.mxu1 %v3912_v20 }
 0x15b   : > { %v698_v44 = vadd.f32 %v3511_v38, %v690_v43 }
 0x15d   : > { %3513 = vmatmul.mubr.msk.f32.gmra.mxu1 %vm655_vm1, %v698_v44 }
 0x15e   : > { %3634 = vmatprep.mubr.msk.f32.mxu1 %vm3913_vm2, %v3912_v20 }
 0x219   : > { %v4121_v45 = vpop.f32.mrf.mxu1 }
 0x21a   : > { %801 = vrot.lane.b32.xlu0 %v4121_v45, %s3914_s15  ;;  %880 = vrot.lane.b32.xlu1 %v4121_v45, %s3915_s13 }
 0x21b   : > { %v785_v46 = vpop.f32.mrf.mxu1 }
 0x21c   : > { %796 = vst.msk [vmem:[#allocation3 + $0x8] sm:$0xff] %vm795_vm3, %v785_v46 }
 0x21d   : > { %v4125_v47 = vpop.f32.mrf.mxu1 }
 0x21e   : > { %956 = vrot.lane.b32.xlu0 %v4121_v45, %s3916_s26  ;;  %878 = vrot.lane.b32.xlu1 %v4121_v45, %s3917_s27 }
 0x21f   : > { %v791_v48 = vpop.f32.mrf.mxu1 }
 0x220   : > { %798 = vst.msk [vmem:[#allocation3 + $0x18] sm:$0xff] %vm795_vm3, %v791_v48 }
 0x222   : > { %1034 = vrot.lane.b32.xlu0 %v4121_v45, %s3918_s25  ;;  %958 = vrot.lane.b32.xlu1 %v4121_v45, %s3919_s22 }
 0x226   : > { %1112 = vrot.lane.b32.xlu0 %v4121_v45, %s3920_s28  ;;  %1036 = vrot.lane.b32.xlu1 %v4121_v45, %s3921_s4 }
 0x22a   : > { %1190 = vrot.lane.b32.xlu0 %v4121_v45, %s3922_s24  ;;  %1114 = vrot.lane.b32.xlu1 %v4121_v45, %s3923_s29 }
 0x22e   : > { %1192 = vrot.lane.b32.xlu1 %v4121_v45, %s3924_s14  ;;  %1348 = vrot.lane.b32.xlu0 %v4125_v47, %s3915_s13  ;;  %s3925_s13 = smov 24  }
 0x232   : > { %1426 = vrot.lane.b32.xlu0 %v4125_v47, %s3919_s22  ;;  %1270 = vrot.lane.b32.xlu1 %v4125_v47, %s3914_s15  ;;  %s4624_s15 = sld [smem:[#allocation9_spill]]  ;;  %s3928_s22 = smov 32  }
 0x236   : > { %1424 = vrot.lane.b32.xlu0 %v4125_v47, %s3916_s26  ;;  %1346 = vrot.lane.b32.xlu1 %v4125_v47, %s3917_s27  ;;  %s3926_s26 = smov 16  }
 0x238   : > { %v4216_v8 = vld [vmem:[%s4624_s15] sm:$0xff] }
 0x23a   : > { %1582 = vrot.lane.b32.xlu0 %v4125_v47, %s3923_s29  ;;  %1504 = vrot.lane.b32.xlu1 %v4125_v47, %s3921_s4 }
 0x23e   : > { %1580 = vrot.lane.b32.xlu0 %v4125_v47, %s3920_s28  ;;  %1502 = vrot.lane.b32.xlu1 %v4125_v47, %s3918_s25  ;;  %s3927_s25 = smov 8   ;;  %s4625_s28 = scalar_lea.vmem %s4603_s6, %s4023_s20 }
 0x242   : > { %1660 = vrot.lane.b32.xlu1 %v4125_v47, %s3924_s14 }
 0x246   : > { %1658 = vrot.lane.b32.xlu1 %v4125_v47, %s3922_s24  ;;  %s4626_s24 = scalar_lea.vmem %s4604_s7, %s4023_s20  ;;  %s4628_s20 = sld [smem:[#allocation11_spill]] (!%p3560_p5) }
 0x28c   : > { %v881_v49 = vpop.permute.xlu1 %880  ;;  %v802_v50 = vpop.permute.xlu0 %801 }
 0x28d   : > { %3633 = vmatpush3.xpose.msk.msra.mxu1 %vm803_vm4, %v802_v50 }
 0x28e   : > { %3637 = vmatprep.subr.mxu1 %v3912_v20 }
 0x290   : > { %v879_v51 = vpop.permute.xlu1 %878  ;;  %3635 = vmatmul.mubr.msk.f32.vlgmr.msra.gmra.mxu1 %vm803_vm4, %v4121_v45  ;;  %v957_v52 = vpop.permute.xlu0 %956 }
 0x291   : > { %3638 = vmatpush3.xpose.msk.msra.mxu1 %vm803_vm4, %v881_v49  ;;  %3639 = vmatprep.mubr.msk.f32.mxu1 %vm3913_vm2, %v3912_v20 }
 0x292   : > { %3642 = vmatprep.subr.mxu1 %v3912_v20 }
 0x294   : > { %v959_v53 = vpop.permute.xlu1 %958  ;;  %3640 = vmatmul.mubr.msk.f32.vlgmr.msra.gmra.mxu1 %vm803_vm4, %v879_v51  ;;  %v1035_v54 = vpop.permute.xlu0 %1034 }
 0x295   : > { %3643 = vmatpush3.xpose.msk.msra.mxu1 %vm803_vm4, %v959_v53  ;;  %3644 = vmatprep.mubr.msk.f32.mxu1 %vm3913_vm2, %v3912_v20 }
 0x296   : > { %3647 = vmatprep.subr.mxu1 %v3912_v20 }
 0x298   : > { %v1037_v55 = vpop.permute.xlu1 %1036  ;;  %3645 = vmatmul.mubr.msk.f32.vlgmr.msra.gmra.mxu1 %vm803_vm4, %v957_v52  ;;  %v1113_v56 = vpop.permute.xlu0 %1112 }
 0x299   : > { %3648 = vmatpush3.xpose.msk.msra.mxu1 %vm803_vm4, %v1037_v55  ;;  %3649 = vmatprep.mubr.msk.f32.mxu1 %vm3913_vm2, %v3912_v20 }
 0x29a   : > { %3652 = vmatprep.subr.mxu1 %v3912_v20 }
 0x29c   : > { %v1115_v57 = vpop.permute.xlu1 %1114  ;;  %3650 = vmatmul.mubr.msk.f32.vlgmr.msra.gmra.mxu1 %vm803_vm4, %v1035_v54  ;;  %v1191_v58 = vpop.permute.xlu0 %1190 }
 0x29d   : > { %3653 = vmatpush3.xpose.msk.msra.mxu1 %vm803_vm4, %v1115_v57  ;;  %3654 = vmatprep.mubr.msk.f32.mxu1 %vm3913_vm2, %v3912_v20 }
 0x29e   : > { %3657 = vmatprep.subr.mxu1 %v3912_v20 }
 0x2a0   : > { %v1193_v59 = vpop.permute.xlu1 %1192  ;;  %3655 = vmatmul.mubr.msk.f32.vlgmr.msra.gmra.mxu1 %vm803_vm4, %v1113_v56  ;;  %v1349_v60 = vpop.permute.xlu0 %1348 }
 0x2a1   : > { %3658 = vmatpush3.xpose.msk.msra.mxu1 %vm803_vm4, %v1193_v59  ;;  %3659 = vmatprep.mubr.msk.f32.mxu1 %vm3913_vm2, %v3912_v20 }
 0x2a2   : > { %3662 = vmatprep.subr.mxu1 %v3912_v20 }
 0x2a4   : > { %v1271_v61 = vpop.permute.xlu1 %1270  ;;  %3660 = vmatmul.mubr.msk.f32.vlgmr.msra.gmra.mxu1 %vm803_vm4, %v1191_v58  ;;  %v1427_v62 = vpop.permute.xlu0 %1426 }
 0x2a5   : > { %3663 = vmatpush3.xpose.msk.msra.mxu1 %vm803_vm4, %v1271_v61  ;;  %3673 = vmatpush3.xpose.msk.msra.mxu0 %vm803_vm4, %v1427_v62  ;;  %v4271_v62 = vld [vmem:[#allocation3 + $0x8] sm:$0xff] }
 0x2a6   : > { %3664 = vmatprep.mubr.msk.f32.mxu1 %vm3913_vm2, %v3912_v20  ;;  %3667 = vmatprep.subr.mxu1 %v3912_v20 }
 0x2a7   : > { %3682 = vmatprep.subr.mxu0 %v3912_v20 }
 0x2a8   : > { %v1347_v63 = vpop.permute.xlu1 %1346  ;;  %3665 = vmatmul.mubr.msk.f32.vlgmr.msra.gmra.mxu1 %vm803_vm4, %v4125_v47  ;;  %v1425_v0 = vpop.permute.xlu0 %1424 }
 0x2a9   : > { %3668 = vmatpush3.xpose.msk.msra.mxu1 %vm803_vm4, %v1349_v60  ;;  %3675 = vmatmul.mubr.msk.f32.vlgmr.msra.gmra.mxu0 %vm803_vm4, %v1425_v0 }
 0x2aa   : > { %3669 = vmatprep.mubr.msk.f32.mxu1 %vm3913_vm2, %v3912_v20  ;;  %3677 = vmatprep.subr.mxu1 %v3912_v20 }
 0x2ab   : > { %3684 = vmatprep.mubr.msk.f32.mxu0 %vm3913_vm2, %v3912_v20 }
 0x2ac   : > { %v1505_v1 = vpop.permute.xlu1 %1504  ;;  %3670 = vmatmul.mubr.msk.f32.vlgmr.msra.gmra.mxu1 %vm803_vm4, %v1347_v63  ;;  %v1583_v2 = vpop.permute.xlu0 %1582 }
 0x2ad   : > { %3678 = vmatpush3.xpose.msk.msra.mxu1 %vm803_vm4, %v1505_v1  ;;  %3683 = vmatpush3.xpose.msk.msra.mxu0 %vm803_vm4, %v1583_v2 }
 0x2ae   : > { %3679 = vmatprep.mubr.msk.f32.mxu1 %vm3913_vm2, %v3912_v20  ;;  %3687 = vmatprep.subr.mxu1 %v3912_v20 }
 0x2af   : > { %3692 = vmatprep.subr.mxu0 %v3912_v20 }
 0x2b0   : > { %v1503_v3 = vpop.permute.xlu1 %1502  ;;  %v1581_v4 = vpop.permute.xlu0 %1580 }
 0x2b1   : > { %3680 = vmatmul.mubr.msk.f32.vlgmr.msra.gmra.mxu1 %vm803_vm4, %v1503_v3  ;;  %3685 = vmatmul.mubr.msk.f32.vlgmr.msra.gmra.mxu0 %vm803_vm4, %v1581_v4 }
 0x2b2   : > { %3689 = vmatprep.mubr.msk.f32.mxu1 %vm3913_vm2, %v3912_v20  ;;  %3694 = vmatprep.mubr.msk.f32.mxu0 %vm3913_vm2, %v3912_v20 }
 0x2b4   : > { %v1661_v5 = vpop.permute.xlu1 %1660 }
 0x2b5   : > { %3688 = vmatpush3.xpose.msk.msra.mxu1 %vm803_vm4, %v1661_v5 }
 0x2b6   : > { %3697 = vmatprep.subr.mxu1 %v3912_v20 }
 0x2b8   : > { %v1659_v6 = vpop.permute.xlu1 %1658 }
 0x2b9   : > { %3690 = vmatmul.mubr.msk.f32.vlgmr.msra.gmra.mxu1 %vm803_vm4, %v1659_v6 }
 0x2ba   : > { %3699 = vmatprep.mubr.msk.f32.mxu1 %vm3913_vm2, %v3912_v20 }
 0x350   : > { %v874_v7 = vpop.f32.mrf.mxu1 }
 0x351   : > { %v1736_v9 = vmul.f32 0.14433756, %v874_v7 }
 0x352   : > { %v3636_v10 = vpop.f32.mrf.mxu1 }
 0x353   : > { %v4219_v11 = vadd.f32 %v4216_v8, %v1736_v9 }
 0x354   : > { %v952_v12 = vpop.f32.mrf.mxu1 }
 0x355   : > { %v1737_v13 = vmul.f32 0.14433756, %v952_v12  ;;  %v1761_v14 = vsel %vm803_vm4, %v4219_v11, -inf }
 0x356   : > { %1762 = vmax.xlane.f32.xlu0 %v1761_v14  ;;  %v3641_v15 = vpop.f32.mrf.mxu1 }
 0x357   : > { %v4224_v16 = vadd.f32 %v4216_v8, %v1737_v13 }
 0x358   : > { %v1030_v17 = vpop.f32.mrf.mxu1 }
 0x359   : > { %v1738_v18 = vmul.f32 0.14433756, %v1030_v17  ;;  %v1764_v19 = vsel %vm803_vm4, %v4224_v16, -inf }
 0x35a   : > { %1765 = vmax.xlane.f32.xlu1 %v1764_v19  ;;  %v3646_v21 = vpop.f32.mrf.mxu1 }
 0x35b   : > { %v4229_v22 = vadd.f32 %v4216_v8, %v1738_v18 }
 0x35c   : > { %v1108_v23 = vpop.f32.mrf.mxu1 }
 0x35d   : > { %v1739_v24 = vmul.f32 0.14433756, %v1108_v23  ;;  %v1767_v25 = vsel %vm803_vm4, %v4229_v22, -inf }
 0x35e   : > { %1768 = vmax.xlane.f32.xlu0 %v1767_v25  ;;  %v3651_v26 = vpop.f32.mrf.mxu1 }
 0x35f   : > { %v4234_v27 = vadd.f32 %v4216_v8, %v1739_v24 }
 0x360   : > { %v1186_v28 = vpop.f32.mrf.mxu1 }
 0x361   : > { %v1740_v29 = vmul.f32 0.14433756, %v1186_v28  ;;  %v1770_v30 = vsel %vm803_vm4, %v4234_v27, -inf }
 0x362   : > { %1771 = vmax.xlane.f32.xlu0 %v1770_v30  ;;  %v3656_v31 = vpop.f32.mrf.mxu1 }
 0x363   : > { %v4239_v32 = vadd.f32 %v4216_v8, %v1740_v29 }
 0x364   : > { %v1264_v33 = vpop.f32.mrf.mxu1 }
 0x365   : > { %v1741_v34 = vmul.f32 0.14433756, %v1264_v33  ;;  %v1773_v35 = vsel %vm803_vm4, %v4239_v32, -inf }
 0x366   : > { %1774 = vmax.xlane.f32.xlu0 %v1773_v35  ;;  %v3661_v36 = vpop.f32.mrf.mxu1 }
 0x367   : > { %v4244_v37 = vadd.f32 %v4216_v8, %v1741_v34 }
 0x368   : > { %v1342_v38 = vpop.f32.mrf.mxu1 }
 0x369   : > { %v1742_v39 = vmul.f32 0.14433756, %v1342_v38  ;;  %v1498_v40 = vpop.f32.mrf.mxu0  ;;  %v1776_v41 = vsel %vm803_vm4, %v4244_v37, -inf }
 0x36a   : > { %v1744_v42 = vmul.f32 0.14433756, %v1498_v40  ;;  %1777 = vmax.xlane.f32.xlu1 %v1776_v41  ;;  %v3666_v43 = vpop.f32.mrf.mxu1 }
 0x36b   : > { %v3676_v44 = vpop.f32.mrf.mxu0  ;;  %v4249_v46 = vadd.f32 %v4216_v8, %v1742_v39 }
 0x36c   : > { %v1420_v48 = vpop.f32.mrf.mxu1  ;;  %v4254_v50 = vadd.f32 %v4216_v8, %v1744_v42 }
 0x36d   : > { %v1779_v49 = vsel %vm803_vm4, %v4249_v46, -inf  ;;  %v1743_v63 = vmul.f32 0.14433756, %v1420_v48 }
 0x36e   : > { %1780 = vmax.xlane.f32.xlu0 %v1779_v49  ;;  %v3671_v51 = vpop.f32.mrf.mxu1  ;;  %v1785_v54 = vsel %vm803_vm4, %v4254_v50, -inf }
 0x36f   : > { %v4276_v1 = vadd.f32 %v4216_v8, %v1743_v63 }
 0x371   : > { %v1576_v52 = vpop.f32.mrf.mxu1  ;;  %v1654_v53 = vpop.f32.mrf.mxu0  ;;  %v1782_v3 = vsel %vm803_vm4, %v4276_v1, -inf }
 0x372   : > { %v1746_v55 = vmul.f32 0.14433756, %v1654_v53  ;;  %1786 = vmax.xlane.f32.xlu0 %v1785_v54  ;;  %v1745_v0 = vmul.f32 0.14433756, %v1576_v52 }
 0x373   : > { %v3681_v56 = vpop.f32.mrf.mxu1  ;;  %v3686_v57 = vpop.f32.mrf.mxu0 }
 0x374   : > { %v4259_v58 = vadd.f32 %v4216_v8, %v1746_v55  ;;  %v4281_v4 = vadd.f32 %v4216_v8, %v1745_v0 }
 0x376   : > { %v1791_v59 = vsel %vm803_vm4, %v4259_v58, -inf }
 0x377   : > { %1792 = vmax.xlane.f32.xlu0 %v1791_v59 }
 0x379   : > { %v1732_v60 = vpop.f32.mrf.mxu1 }
 0x37a   : > { %v1747_v2 = vmul.f32 0.14433756, %v1732_v60 }
 0x37b   : > { %1972 = vrot.lane.b32.xlu1 %v4121_v45, %s3925_s13  ;;  %v3691_v61 = vpop.f32.mrf.mxu1 }
 0x37c   : > { %v4286_v5 = vadd.f32 %v4216_v8, %v1747_v2 }
 0x37e   : > { %v1794_v6 = vsel %vm803_vm4, %v4286_v5, -inf }
 0x37f   : > { %2056 = vrot.lane.b32.xlu1 %v4121_v45, %s3926_s26 }
 0x383   : > { %2140 = vrot.lane.b32.xlu1 %v4121_v45, %s3927_s25 }
 0x38d   : > { %1893 = vrot.lane.b32.xlu0 %v4121_v45, %s3928_s22  ;;  %v1788_v45 = vsel %vm803_vm4, %v4281_v4, -inf }
 0x391   : > { %2304 = vrot.lane.b32.xlu0 %v4271_v62, %s3917_s27 }
 0x3a7   : > { %1783 = vmax.xlane.f32.xlu1 %v1782_v3 }
 0x3ab   : > { %1789 = vmax.xlane.f32.xlu1 %v1788_v45 }
 0x3af   : > { %1795 = vmax.xlane.f32.xlu1 %v1794_v6 }
 0x3c0   : > { %2388 = vrot.lane.b32.xlu1 %v4125_v47, %s3928_s22 }
 0x3df   : > { %v1763_v7 = vpop.xlane.xlu0 %1762 }
 0x3e0   : > { %v1797_v9 = vsub.f32 %v4219_v11, %v1763_v7 }
 0x3e2   : > { %v1809_v10 = vmul.f32 1.442695, %v1797_v9 }
 0x3e3   : > { %v1766_v12 = vpop.xlane.xlu1 %1765 }
 0x3e4   : > { %3822 = vpow2.f32 %v1809_v10  ;;  %v1798_v13 = vsub.f32 %v4224_v16, %v1766_v12 }
 0x3e6   : > { %v1811_v14 = vmul.f32 1.442695, %v1798_v13 }
 0x3e7   : > { %v1769_v15 = vpop.xlane.xlu0 %1768 }
 0x3e8   : > { %3824 = vpow2.f32 %v1811_v14  ;;  %v1799_v29 = vsub.f32 %v4229_v22, %v1769_v15 }
 0x3ea   : > { %v1813_v34 = vmul.f32 1.442695, %v1799_v29 }
 0x3eb   : > { %v1772_v8 = vpop.xlane.xlu0 %1771 }
 0x3ec   : > { %v1800_v17 = vsub.f32 %v4234_v27, %v1772_v8 }
 0x3ee   : > { %v1815_v18 = vmul.f32 1.442695, %v1800_v17 }
 0x3ef   : > { %v1775_v23 = vpop.xlane.xlu0 %1774 }
 0x3f0   : > { %3826 = vpow2.f32 %v1815_v18  ;;  %v1801_v39 = vsub.f32 %v4239_v32, %v1775_v23 }
 0x3f1   : > { %v4295_v19 = vpop.eup %3822 }
 0x3f2   : > { %v1833_v21 = vsel %vm803_vm4, %v4295_v19, 0.0  ;;  %v1817_v42 = vmul.f32 1.442695, %v1801_v39 }
 0x3f3   : > { %v1778_v11 = vpop.xlane.xlu1 %1777  ;;  %1834 = vadd.xlane.f32.xlu0 %v1833_v21 }
 0x3f4   : > { %v1802_v24 = vsub.f32 %v4244_v37, %v1778_v11 }
 0x3f5   : > { %v4300_v25 = vpop.eup %3824 }
 0x3f6   : > { %v1819_v16 = vmul.f32 1.442695, %v1802_v24  ;;  %v1836_v26 = vsel %vm803_vm4, %v4300_v25, 0.0 }
 0x3f7   : > { %v1973_v28 = vpop.permute.xlu1 %1972  ;;  %1837 = vadd.xlane.f32.xlu1 %v1836_v26  ;;  %v1781_v27 = vpop.xlane.xlu0 %1780 }
 0x3f8   : > { %3828 = vpow2.f32 %v1819_v16  ;;  %3698 = vmatpush3.msra.mxu1 %v1973_v28  ;;  %v1803_v43 = vsub.f32 %v4249_v46, %v1781_v27 }
 0x3f9   : > { %3707 = vmatprep.subr.mxu1 %v3912_v20 }
 0x3fa   : > { %v1821_v48 = vmul.f32 1.442695, %v1803_v43 }
 0x3fb   : > { %v1787_v30 = vpop.xlane.xlu0 %1786  ;;  %v2057_v57 = vpop.permute.xlu1 %2056 }
 0x3fc   : > { %v1805_v31 = vsub.f32 %v4254_v50, %v1787_v30 }
 0x3fd   : > { %v4307_v33 = vpop.eup %3826 }
 0x3fe   : > { %v1825_v35 = vmul.f32 1.442695, %v1805_v31  ;;  %v1842_v36 = vsel %vm803_vm4, %v4307_v33, 0.0 }
 0x3ff   : > { %1843 = vadd.xlane.f32.xlu1 %v1842_v36 }
 0x400   : > { %3830 = vpow2.f32 %v1825_v35  ;;  %v1793_v37 = vpop.xlane.xlu0 %1792 }
 0x401   : > { %v1807_v38 = vsub.f32 %v4259_v58, %v1793_v37  ;;  %3832 = vpow2.f32 %v1813_v34  ;;  %v2141_v58 = vpop.permute.xlu1 %2140 }
 0x403   : > { %v1829_v40 = vmul.f32 1.442695, %v1807_v38 }
 0x404   : > { %v1894_v22 = vpop.permute.xlu0 %1893 }
 0x405   : > { %v4313_v41 = vpop.eup %3828  ;;  %3693 = vmatpush3.msra.mxu0 %v1894_v22  ;;  %3834 = vpow2.f32 %v1829_v40 }
 0x406   : > { %v1848_v44 = vsel %vm803_vm4, %v4313_v41, 0.0  ;;  %3702 = vmatprep.subr.mxu0 %v3912_v20  ;;  %3836 = vpow2.f32 %v1817_v42 }
 0x407   : > { %1849 = vadd.xlane.f32.xlu1 %v1848_v44  ;;  %3838 = vpow2.f32 %v1821_v48 }
 0x408   : > { %v2305_v12 = vpop.permute.xlu0 %2304 }
 0x40d   : > { %v4319_v49 = vpop.eup %3830 }
 0x40e   : > { %v1857_v32 = vsel %vm803_vm4, %v4319_v49, 0.0  ;;  %v4323_v50 = vpop.eup %3832 }
 0x40f   : > { %1858 = vadd.xlane.f32.xlu0 %v1857_v32  ;;  %v1839_v46 = vsel %vm803_vm4, %v4323_v50, 0.0 }
 0x412   : > { %v4327_v51 = vpop.eup %3834 }
 0x413   : > { %1840 = vadd.xlane.f32.xlu0 %v1839_v46  ;;  %v1863_v52 = vsel %vm803_vm4, %v4327_v51, 0.0  ;;  %v4331_v53 = vpop.eup %3836 }
 0x414   : > { %v1845_v54 = vsel %vm803_vm4, %v4331_v53, 0.0  ;;  %v4337_v55 = vpop.eup %3838 }
 0x415   : > { %v1851_v56 = vsel %vm803_vm4, %v4337_v55, 0.0 }
 0x417   : > { %1864 = vadd.xlane.f32.xlu0 %v1863_v52 }
 0x418   : > { %2550 = vrot.lane.b32.xlu1 %v4125_v47, %s3926_s26 }
 0x41b   : > { %1846 = vadd.xlane.f32.xlu0 %v1845_v54 }
 0x41f   : > { %1852 = vadd.xlane.f32.xlu0 %v1851_v56 }
 0x430   : > { %v1784_v59 = vpop.xlane.xlu1 %1783 }
 0x431   : > { %v1804_v60 = vsub.f32 %v4276_v1, %v1784_v59 }
 0x433   : > { %v1823_v61 = vmul.f32 1.442695, %v1804_v60 }
 0x434   : > { %v1790_v63 = vpop.xlane.xlu1 %1789 }
 0x435   : > { %3840 = vpow2.f32 %v1823_v61  ;;  %v1806_v0 = vsub.f32 %v4281_v4, %v1790_v63  ;;  %2467 = vrot.lane.b32.xlu0 %v4125_v47, %s3925_s13 }
 0x437   : > { %v1827_v2 = vmul.f32 1.442695, %v1806_v0 }
 0x438   : > { %v1796_v3 = vpop.xlane.xlu1 %1795 }
 0x439   : > { %3842 = vpow2.f32 %v1827_v2  ;;  %v1808_v45 = vsub.f32 %v4286_v5, %v1796_v3  ;;  %2633 = vrot.lane.b32.xlu0 %v4125_v47, %s3927_s25  ;;  %v4360_v47 = vld [vmem:[#allocation3 + $0x18] sm:$0xff] }
 0x43b   : > { %v1831_v6 = vmul.f32 1.442695, %v1808_v45 }
 0x43c   : > { %v2389_v13 = vpop.permute.xlu1 %2388 }
 0x43d   : > { %3844 = vpow2.f32 %v1831_v6 }
 0x442   : > { %v4348_v7 = vpop.eup %3840 }
 0x443   : > { %v1854_v1 = vsel %vm803_vm4, %v4348_v7, 0.0 }
 0x444   : > { %1855 = vadd.xlane.f32.xlu1 %v1854_v1 }
 0x446   : > { %v4352_v4 = vpop.eup %3842 }
 0x447   : > { %v1860_v9 = vsel %vm803_vm4, %v4352_v4, 0.0 }
 0x448   : > { %1861 = vadd.xlane.f32.xlu1 %v1860_v9 }
 0x44a   : > { %v4356_v10 = vpop.eup %3844 }
 0x44b   : > { %v1866_v5 = vsel %vm803_vm4, %v4356_v10, 0.0 }
 0x44c   : > { %1867 = vadd.xlane.f32.xlu1 %v1866_v5  ;;  %v2882_v5 = vld [vmem:[%s4055_s1 + $0x20] sm:$0xff] }
 0x45d   : > { %2795 = vrot.lane.b32.xlu1 %v4360_v47, %s3917_s27 }
 0x47c   : > { %v1835_v14 = vpop.xlane.xlu0 %1834 }
 0x47d   : > { %3846 = vrcp.f32 %v1835_v14 }
 0x480   : > { %v1838_v15 = vpop.xlane.xlu1 %1837 }
 0x481   : > { %3848 = vrcp.f32 %v1838_v15  ;;  %v2879_v15 = vld [vmem:[%s4055_s1 + $0x8] sm:$0xff] }
 0x488   : > { %v1844_v8 = vpop.xlane.xlu1 %1843 }
 0x489   : > { %3850 = vrcp.f32 %v1844_v8 }
 0x48a   : > { %v3847_v17 = vpop.eup %3846 }
 0x48b   : > { %v1881_v18 = vmul.f32 %v3847_v17, %v4295_v19  ;;  %v2878_v17 = vld [vmem:[%s4055_s1] sm:$0xff] }
 0x48d   : > { %3695 = vmatmul.mubr.msk.f32.vlgmr.msra.gmra.mxu0 %vm803_vm4, %v1881_v18 }
 0x48e   : > { %v3849_v21 = vpop.eup %3848  ;;  %3703 = vmatpush3.msra.mxu0 %v2057_v57  ;;  %3704 = vmatprep.mubr.msk.f32.mxu0 %vm3913_vm2, %v3912_v20 }
 0x48f   : > { %v1882_v23 = vmul.f32 %v3849_v21, %v4300_v25  ;;  %3712 = vmatprep.subr.mxu0 %v3912_v20 }
 0x490   : > { %v1850_v11 = vpop.xlane.xlu1 %1849 }
 0x491   : > { %3852 = vrcp.f32 %v1850_v11  ;;  %3700 = vmatmul.mubr.msk.f32.vlgmr.msra.gmra.mxu1 %vm803_vm4, %v1882_v23 }
 0x492   : > { %3708 = vmatpush3.msra.mxu1 %v2141_v58  ;;  %3709 = vmatprep.mubr.msk.f32.mxu1 %vm3913_vm2, %v3912_v20 }
 0x493   : > { %3717 = vmatprep.subr.mxu1 %v3912_v20 }
 0x494   : > { %v2551_v39 = vpop.permute.xlu1 %2550 }
 0x496   : > { %v3851_v19 = vpop.eup %3850 }
 0x497   : > { %v1884_v24 = vmul.f32 %v3851_v19, %v4307_v33 }
 0x498   : > { %v1859_v16 = vpop.xlane.xlu0 %1858 }
 0x499   : > { %3710 = vmatmul.mubr.msk.f32.vlgmr.msra.gmra.mxu1 %vm803_vm4, %v1884_v24 }
 0x49a   : > { %3718 = vmatpush3.msra.mxu1 %v2305_v12  ;;  %3719 = vmatprep.mubr.msk.f32.mxu1 %vm3913_vm2, %v3912_v20  ;;  %v2881_v12 = vld [vmem:[%s4055_s1 + $0x18] sm:$0xff] }
 0x49b   : > { %3727 = vmatprep.subr.mxu1 %v3912_v20 }
 0x49c   : > { %v1841_v25 = vpop.xlane.xlu0 %1840 }
 0x49d   : > { %3854 = vrcp.f32 %v1841_v25 }
 0x49e   : > { %v3853_v26 = vpop.eup %3852 }
 0x49f   : > { %v1886_v28 = vmul.f32 %v3853_v26, %v4313_v41 }
 0x4a0   : > { %v1865_v27 = vpop.xlane.xlu0 %1864 }
 0x4a1   : > { %3720 = vmatmul.mubr.msk.f32.vlgmr.msra.gmra.mxu1 %vm803_vm4, %v1886_v28 }
 0x4a2   : > { %3729 = vmatprep.mubr.msk.f32.mxu1 %vm3913_vm2, %v3912_v20 }
 0x4a4   : > { %v1847_v29 = vpop.xlane.xlu0 %1846 }
 0x4a5   : > { %3856 = vrcp.f32 %v1847_v29 }
 0x4a8   : > { %v1853_v30 = vpop.xlane.xlu0 %1852 }
 0x4a9   : > { %3858 = vrcp.f32 %v1853_v30 }
 0x4aa   : > { %v3855_v31 = vpop.eup %3854  ;;  %3860 = vrcp.f32 %v1859_v16 }
 0x4ab   : > { %v1883_v33 = vmul.f32 %v3855_v31, %v4323_v50  ;;  %3862 = vrcp.f32 %v1865_v27 }
 0x4ac   : > { %v2468_v34 = vpop.permute.xlu0 %2467 }
 0x4ad   : > { %3705 = vmatmul.mubr.msk.f32.vlgmr.msra.gmra.mxu0 %vm803_vm4, %v1883_v33  ;;  %3728 = vmatpush3.msra.mxu1 %v2468_v34 }
 0x4ae   : > { %3713 = vmatpush3.msra.mxu0 %v4271_v62  ;;  %3714 = vmatprep.mubr.msk.f32.mxu0 %vm3913_vm2, %v3912_v20 }
 0x4af   : > { %3722 = vmatprep.subr.mxu0 %v3912_v20  ;;  %3737 = vmatprep.subr.mxu1 %v3912_v20 }
 0x4b0   : > { %v2634_v32 = vpop.permute.xlu0 %2633 }
 0x4b2   : > { %v3857_v35 = vpop.eup %3856 }
 0x4b3   : > { %v1885_v36 = vmul.f32 %v3857_v35, %v4331_v53  ;;  %v3552_v35 = vld [vmem:[%s4625_s28] ss:$0 sm:$0xff] }
 0x4b5   : > { %3715 = vmatmul.mubr.msk.f32.vlgmr.msra.gmra.mxu0 %vm803_vm4, %v1885_v36  ;;  %v3874_v36 = vld [vmem:[#allocation2 + $0x8] sm:$0xff] }
 0x4b6   : > { %v3859_v37 = vpop.eup %3858  ;;  %3723 = vmatpush3.msra.mxu0 %v2389_v13  ;;  %3724 = vmatprep.mubr.msk.f32.mxu0 %vm3913_vm2, %v3912_v20  ;;  %v2880_v13 = vld [vmem:[%s4055_s1 + $0x10] sm:$0xff] }
 0x4b7   : > { %3732 = vmatprep.subr.mxu0 %v3912_v20  ;;  %v1887_v62 = vmul.f32 %v3859_v37, %v4337_v55  ;;  %v3861_v38 = vpop.eup %3860 }
 0x4b8   : > { %v1889_v40 = vmul.f32 %v3861_v38, %v4319_v49  ;;  %v3863_v22 = vpop.eup %3862 }
 0x4b9   : > { %3725 = vmatmul.mubr.msk.f32.vlgmr.msra.gmra.mxu0 %vm803_vm4, %v1887_v62  ;;  %v1891_v41 = vmul.f32 %v3863_v22, %v4327_v51 }
 0x4ba   : > { %3733 = vmatpush3.msra.mxu0 %v2551_v39  ;;  %3734 = vmatprep.mubr.msk.f32.mxu0 %vm3913_vm2, %v3912_v20  ;;  %v3875_v39 = vld [vmem:[#allocation2] sm:$0xff] }
 0x4bb   : > { %3742 = vmatprep.subr.mxu0 %v3912_v20 }
 0x4bd   : > { %3735 = vmatmul.mubr.msk.f32.vlgmr.msra.gmra.mxu0 %vm803_vm4, %v1889_v40 }
 0x4be   : > { %3743 = vmatpush3.msra.mxu0 %v4360_v47  ;;  %3744 = vmatprep.mubr.msk.f32.mxu0 %vm3913_vm2, %v3912_v20 }
 0x4c1   : > { %3745 = vmatmul.mubr.msk.f32.vlgmr.msra.gmra.mxu0 %vm803_vm4, %v1891_v41 }
 0x4cd   : > { %v1856_v42 = vpop.xlane.xlu1 %1855 }
 0x4ce   : > { %3864 = vrcp.f32 %v1856_v42 }
 0x4d1   : > { %v1862_v43 = vpop.xlane.xlu1 %1861 }
 0x4d2   : > { %3866 = vrcp.f32 %v1862_v43 }
 0x4d5   : > { %v1868_v44 = vpop.xlane.xlu1 %1867 }
 0x4d6   : > { %3868 = vrcp.f32 %v1868_v44 }
 0x4d9   : > { %v2796_v51 = vpop.permute.xlu1 %2795 }
 0x4db   : > { %v3865_v48 = vpop.eup %3864 }
 0x4dc   : > { %v1888_v49 = vmul.f32 %v3865_v48, %v4348_v7 }
 0x4de   : > { %3730 = vmatmul.mubr.msk.f32.vlgmr.msra.gmra.mxu1 %vm803_vm4, %v1888_v49 }
 0x4df   : > { %v3867_v50 = vpop.eup %3866  ;;  %3738 = vmatpush3.msra.mxu1 %v2634_v32  ;;  %3739 = vmatprep.mubr.msk.f32.mxu1 %vm3913_vm2, %v3912_v20 }
 0x4e0   : > { %3747 = vmatprep.subr.mxu1 %v3912_v20  ;;  %v1890_v46 = vmul.f32 %v3867_v50, %v4352_v4 }
 0x4e2   : > { %3740 = vmatmul.mubr.msk.f32.vlgmr.msra.gmra.mxu1 %vm803_vm4, %v1890_v46 }
 0x4e3   : > { %v3869_v52 = vpop.eup %3868  ;;  %3748 = vmatpush3.msra.mxu1 %v2796_v51  ;;  %3749 = vmatprep.mubr.msk.f32.mxu1 %vm3913_vm2, %v3912_v20 }
 0x4e4   : > { %v1892_v53 = vmul.f32 %v3869_v52, %v4356_v10  ;;  %v2883_v10 = vld [vmem:[%s4055_s1 + $0x28] sm:$0xff] }
 0x4e5   : > { %3752 = vmatprep.subr.mxu0 %v2883_v10 }
 0x4e6   : > { %3750 = vmatmul.mubr.msk.f32.vlgmr.msra.gmra.mxu1 %vm803_vm4, %v1892_v53  ;;  %3753 = vmatpush3.msra.mxu0 %v2883_v10  ;;  %v3140_v10 = vld [vmem:[%s4076_s16 + $0x48] sm:$0xff] }
 0x4e7   : > { %3114 = vmatprep.mubr.f32.mxu1 %v3912_v20  ;;  %3754 = vmatprep.subr.mxu0 %v2882_v5 }
 0x4e8   : > { %3755 = vmatpush3.msra.mxu0 %v2882_v5  ;;  %v3139_v5 = vld [vmem:[%s4076_s16 + $0x40] sm:$0xff] }
 0x4e9   : > { %3756 = vmatprep.subr.mxu0 %v2881_v12 }
 0x4ea   : > { %3757 = vmatpush3.msra.mxu0 %v2881_v12  ;;  %v3137_v12 = vld [vmem:[%s4076_s16 + $0x30] sm:$0xff] }
 0x4eb   : > { %3758 = vmatprep.subr.mxu0 %v2880_v13 }
 0x4ec   : > { %3759 = vmatpush3.msra.mxu0 %v2880_v13  ;;  %v3136_v13 = vld [vmem:[%s4076_s16 + $0x28] sm:$0xff] }
 0x4ed   : > { %3760 = vmatprep.subr.mxu0 %v2879_v15 }
 0x4ee   : > { %3761 = vmatpush3.msra.mxu0 %v2879_v15  ;;  %v3134_v15 = vld [vmem:[%s4076_s16 + $0x18] sm:$0xff] }
 0x4ef   : > { %3762 = vmatprep.subr.mxu0 %v2878_v17 }
 0x4f0   : > { %3763 = vmatpush3.msra.mxu0 %v2878_v17  ;;  %v3132_v17 = vld [vmem:[%s4076_s16 + $0x8] sm:$0xff] }
 0x4f1   : > { %3162 = vmatprep.subr.mxu0 %v3912_v20 }
 0x54d   : > { %v1965_v54 = vpop.f32.mrf.mxu0 }
 0x54e   : > { %1969 = vst.msk [vmem:[#allocation4] sm:$0xff] %vm803_vm4, %v1965_v54  ;;  %v3031_v54 = vld [vmem:[%s4060_s30 + $0x58] sm:$0xff] }
 0x54f   : > { %v3696_v55 = vpop.f32.mrf.mxu0  ;;  %3070 = vmatprep.subr.mxu1 %v3031_v54 }
 0x550   : > { %v3030_v55 = vld [vmem:[%s4060_s30 + $0x50] sm:$0xff] }
 0x551   : > { %v2044_v56 = vpop.f32.mrf.mxu1  ;;  %3071 = vmatpush1.msra.mxu1 %v3030_v55 }
 0x552   : > { %2049 = vrot.lane.b32.xlu0 %v2044_v56, %s3927_s25  ;;  %v3029_v56 = vld [vmem:[%s4060_s30 + $0x48] sm:$0xff] }
 0x553   : > { %v3701_v57 = vpop.f32.mrf.mxu1  ;;  %3072 = vmatprep.subr.mxu1 %v3029_v56 }
 0x554   : > { %v3028_v57 = vld [vmem:[%s4060_s30 + $0x40] sm:$0xff] }
 0x555   : > { %3073 = vmatpush1.msra.mxu1 %v3028_v57 }
 0x559   : > { %v2212_v58 = vpop.f32.mrf.mxu1 }
 0x55b   : > { %v3711_v59 = vpop.f32.mrf.mxu1 }
 0x55c   : > { %v3026_v59 = vld [vmem:[%s4060_s30 + $0x30] sm:$0xff] }
 0x561   : > { %v2376_v60 = vpop.f32.mrf.mxu1 }
 0x563   : > { %v3721_v61 = vpop.f32.mrf.mxu1 }
 0x564   : > { %v3024_v61 = vld [vmem:[%s4060_s30 + $0x20] sm:$0xff] }
 0x56d   : > { %v2128_v63 = vpop.f32.mrf.mxu0 }
 0x56e   : > { %2133 = vrot.lane.b32.xlu1 %v2128_v63, %s3926_s26  ;;  %v3023_v63 = vld [vmem:[%s4060_s30 + $0x18] sm:$0xff] }
 0x56f   : > { %v3706_v0 = vpop.f32.mrf.mxu0 }
 0x570   : > { %v3022_v0 = vld [vmem:[%s4060_s30 + $0x10] sm:$0xff] }
 0x572   : > { %2217 = vrot.lane.b32.xlu1 %v2212_v58, %s3925_s13  ;;  %v3027_v58 = vld [vmem:[%s4060_s30 + $0x38] sm:$0xff] }
 0x573   : > { %3074 = vmatprep.subr.mxu1 %v3027_v58 }
 0x574   : > { %3075 = vmatpush1.msra.mxu1 %v3026_v59 }
 0x575   : > { %v2292_v2 = vpop.f32.mrf.mxu0 }
 0x576   : > { %2297 = vrot.lane.b32.xlu1 %v2292_v2, %s3928_s22  ;;  %v3021_v2 = vld [vmem:[%s4060_s30 + $0x8] sm:$0xff] }
 0x577   : > { %v3716_v3 = vpop.f32.mrf.mxu0 }
 0x578   : > { %v3020_v3 = vld [vmem:[%s4060_s30] sm:$0xff] }
 0x579   : > { %v2460_v45 = vpop.f32.mrf.mxu0 }
 0x57a   : > { %2464 = vst.msk [vmem:[#allocation4 + $0x8] sm:$0xff] %vm803_vm4, %v2460_v45  ;;  %2381 = vrot.lane.b32.xlu1 %v2376_v60, %s3924_s14  ;;  %v3025_v60 = vld [vmem:[%s4060_s30 + $0x28] sm:$0xff]  ;;  %v3146_v45 = vld [vmem:[%s4076_s16 + $0x78] sm:$0xff] }
 0x57b   : > { %v3726_v6 = vpop.f32.mrf.mxu0  ;;  %3076 = vmatprep.subr.mxu1 %v3025_v60 }
 0x57c   : > { %3077 = vmatpush1.msra.mxu1 %v3024_v61  ;;  %v3145_v6 = vld [vmem:[%s4076_s16 + $0x70] sm:$0xff] }
 0x57d   : > { %v2622_v7 = vpop.f32.mrf.mxu0  ;;  %3078 = vmatprep.subr.mxu1 %v3023_v63 }
 0x57e   : > { %3079 = vmatpush1.msra.mxu1 %v3022_v0 }
 0x57f   : > { %v3736_v1 = vpop.f32.mrf.mxu0  ;;  %3080 = vmatprep.subr.mxu1 %v3021_v2  ;;  %v3559_v2 = vld [vmem:[%s641_s23] ss:$0 sm:$0xff] }
 0x580   : > { %3081 = vmatpush1.msra.mxu1 %v3020_v3  ;;  %v3143_v1 = vld [vmem:[%s4076_s16 + $0x60] sm:$0xff] }
 0x581   : > { %v2784_v4 = vpop.f32.mrf.mxu0 }
 0x583   : > { %v3746_v9 = vpop.f32.mrf.mxu0 }
 0x584   : > { %v3141_v9 = vld [vmem:[%s4076_s16 + $0x50] sm:$0xff] }
 0x59e   : > { %v2539_v47 = vpop.f32.mrf.mxu1 }
 0x59f   : > { %2544 = vrot.lane.b32.xlu0 %v2539_v47, %s3927_s25  ;;  %v3138_v47 = vld [vmem:[%s4076_s16 + $0x38] sm:$0xff] }
 0x5a0   : > { %v3731_v14 = vpop.f32.mrf.mxu1 }
 0x5a1   : > { %v3135_v14 = vld [vmem:[%s4076_s16 + $0x20] sm:$0xff] }
 0x5a2   : > { %v2705_v8 = vpop.f32.mrf.mxu1 }
 0x5a3   : > { %2627 = vrot.lane.b32.xlu0 %v2622_v7, %s3926_s26  ;;  %v3144_v7 = vld [vmem:[%s4076_s16 + $0x68] sm:$0xff] }
 0x5a4   : > { %v3741_v18 = vpop.f32.mrf.mxu1 }
 0x5a5   : > { %v3131_v18 = vld [vmem:[%s4076_s16] sm:$0xff] }
 0x5a6   : > { %v2867_v21 = vpop.f32.mrf.mxu1 }
 0x5a7   : > { %2710 = vrot.lane.b32.xlu0 %v2705_v8, %s3925_s13  ;;  %2872 = vrot.lane.b32.xlu1 %v2867_v21, %s3924_s14  ;;  %v3133_v8 = vld [vmem:[%s4076_s16 + $0x10] sm:$0xff]  ;;  %v3154_v21 = vld [vmem:[%s4076_s16 + $0xb8] sm:$0xff] }
 0x5a8   : > { %v3751_v23 = vpop.f32.mrf.mxu1 }
 0x5a9   : > { %v3153_v23 = vld [vmem:[%s4076_s16 + $0xb0] sm:$0xff] }
 0x5ab   : > { %2789 = vrot.lane.b32.xlu0 %v2784_v4, %s3928_s22  ;;  %v3142_v4 = vld [vmem:[%s4076_s16 + $0x58] sm:$0xff] }
 0x5c4   : > { %v2050_v11 = vpop.permute.xlu0 %2049 }
 0x5c5   : > { %2053 = vst.msk [vmem:[#allocation4] sm:$0xff] %vm2052_vm5, %v2050_v11  ;;  %v3152_v11 = vld [vmem:[%s4076_s16 + $0xa8] sm:$0xff] }
 0x5e0   : > { %v2134_v19 = vpop.permute.xlu1 %2133 }
 0x5e1   : > { %2137 = vst.msk [vmem:[#allocation4] sm:$0xff] %vm2136_vm6, %v2134_v19  ;;  %v3151_v19 = vld [vmem:[%s4076_s16 + $0xa0] sm:$0xff] }
 0x5e4   : > { %v2218_v24 = vpop.permute.xlu1 %2217 }
 0x5e5   : > { %2221 = vst.msk [vmem:[#allocation4] sm:$0xff] %vm2220_vm7, %v2218_v24 }
 0x5e8   : > { %v2298_v16 = vpop.permute.xlu1 %2297 }
 0x5e9   : > { %2301 = vst.msk [vmem:[#allocation4] sm:$0xff] %vm2300_vm8, %v2298_v16 }
 0x5ec   : > { %v2382_v25 = vpop.permute.xlu1 %2381 }
 0x5ed   : > { %2385 = vst.msk [vmem:[#allocation4] sm:$0xff] %vm2384_vm9, %v2382_v25 }
 0x5f4   : > { %v2876_v26 = vld [vmem:[#allocation4] sm:$0xff] }
 0x5f5   : > { %3764 = vmatprep.mubr.msk.f32.mxu0 %vm655_vm1, %v2876_v26 }
 0x611   : > { %v2545_v28 = vpop.permute.xlu0 %2544 }
 0x612   : > { %2547 = vst.msk [vmem:[#allocation4 + $0x8] sm:$0xff] %vm2052_vm5, %v2545_v28 }
 0x615   : > { %v2628_v27 = vpop.permute.xlu0 %2627 }
 0x616   : > { %2630 = vst.msk [vmem:[#allocation4 + $0x8] sm:$0xff] %vm2136_vm6, %v2628_v27 }
 0x619   : > { %v2711_v29 = vpop.permute.xlu0 %2710  ;;  %v2873_v31 = vpop.permute.xlu1 %2872 }
 0x61a   : > { %2713 = vst.msk [vmem:[#allocation4 + $0x8] sm:$0xff] %vm2220_vm7, %v2711_v29 }
 0x61d   : > { %v2790_v30 = vpop.permute.xlu0 %2789 }
 0x61e   : > { %2792 = vst.msk [vmem:[#allocation4 + $0x8] sm:$0xff] %vm2300_vm8, %v2790_v30  ;;  %v3553_v30 = vld [vmem:[%s4626_s24] ss:$0 sm:$0xff] }
 0x61f   : > { %2875 = vst.msk [vmem:[#allocation4 + $0x8] sm:$0xff] %vm2384_vm9, %v2873_v31 }
 0x626   : > { %v2877_v33 = vld [vmem:[#allocation4 + $0x8] sm:$0xff] }
 0x627   : > { %3765 = vmatmul.mubr.msk.f32.vlgmr.msra.gmra.mxu0 %vm655_vm1, %v2877_v33  ;;  %v3554_v33 = vld [vmem:[%s4627_s17] ss:$0 sm:$0xff]  ;;  %s4629_s17 = sld [smem:[#allocation12_spill]] (!%p3560_p5) }
 0x628   : > { %3163 = vmatpush1.msra.mxu0 %v3146_v45 }
 0x629   : > { %3164 = vmatprep.subr.mxu0 %v3912_v20 }
 0x62a   : > { %3165 = vmatpush1.msra.mxu0 %v3145_v6 }
 0x62b   : > { %3166 = vmatprep.subr.mxu0 %v3912_v20 }
 0x62c   : > { %3167 = vmatpush1.msra.mxu0 %v3144_v7 }
 0x62d   : > { %3168 = vmatprep.subr.mxu0 %v3912_v20 }
 0x62e   : > { %3169 = vmatpush1.msra.mxu0 %v3143_v1 }
 0x62f   : > { %3170 = vmatprep.subr.mxu0 %v3912_v20 }
 0x630   : > { %3171 = vmatpush1.msra.mxu0 %v3142_v4 }
 0x631   : > { %3172 = vmatprep.subr.mxu0 %v3912_v20 }
 0x632   : > { %3173 = vmatpush1.msra.mxu0 %v3141_v9 }
 0x633   : > { %3174 = vmatprep.subr.mxu0 %v3912_v20 }
 0x634   : > { %3175 = vmatpush1.msra.mxu0 %v3140_v10 }
 0x635   : > { %3176 = vmatprep.subr.mxu0 %v3912_v20 }
 0x636   : > { %3177 = vmatpush1.msra.mxu0 %v3139_v5 }
 0x637   : > { %3178 = vmatprep.subr.mxu0 %v3912_v20 }
 0x638   : > { %3179 = vmatpush1.msra.mxu0 %v3138_v47 }
 0x639   : > { %3180 = vmatprep.subr.mxu0 %v3912_v20 }
 0x63a   : > { %3181 = vmatpush1.msra.mxu0 %v3137_v12 }
 0x63b   : > { %3182 = vmatprep.subr.mxu0 %v3912_v20 }
 0x63c   : > { %3183 = vmatpush1.msra.mxu0 %v3136_v13 }
 0x63d   : > { %3184 = vmatprep.subr.mxu0 %v3912_v20 }
 0x63e   : > { %3185 = vmatpush1.msra.mxu0 %v3135_v14 }
 0x63f   : > { %3186 = vmatprep.subr.mxu0 %v3912_v20 }
 0x640   : > { %3187 = vmatpush1.msra.mxu0 %v3134_v15 }
 0x641   : > { %3188 = vmatprep.subr.mxu0 %v3912_v20 }
 0x642   : > { %3189 = vmatpush1.msra.mxu0 %v3133_v8 }
 0x643   : > { %3190 = vmatprep.subr.mxu0 %v3912_v20 }
 0x644   : > { %3191 = vmatpush1.msra.mxu0 %v3132_v17 }
 0x645   : > { %3192 = vmatprep.subr.mxu0 %v3912_v20 }
 0x646   : > { %3193 = vmatpush1.msra.mxu0 %v3131_v18 }
 0x647   : > { %3210 = vmatprep.subr.mxu0 %v3912_v20 }
 0x648   : > { %3211 = vmatpush2.msra.mxu0 %v3154_v21 }
 0x649   : > { %3212 = vmatprep.subr.mxu0 %v3912_v20 }
 0x64a   : > { %3213 = vmatpush2.msra.mxu0 %v3153_v23 }
 0x64b   : > { %3214 = vmatprep.subr.mxu0 %v3912_v20 }
 0x64c   : > { %3215 = vmatpush2.msra.mxu0 %v3152_v11 }
 0x64d   : > { %3216 = vmatprep.subr.mxu0 %v3912_v20 }
 0x64e   : > { %3217 = vmatpush2.msra.mxu0 %v3151_v19 }
 0x64f   : > { %3218 = vmatprep.subr.mxu0 %v3912_v20 }
 0x6e7   : > { %v3766_v34 = vpop.f32.mrf.mxu0 }
 0x6e8   : > { %v2966_v37 = vadd.f32 %v3874_v36, %v3766_v34 }
 0x6e9   : > { %v2956_v62 = vpop.f32.mrf.mxu0 }
 0x6ea   : > { %v4453_v38 = vadd.f32 %v3552_v35, %v2966_v37  ;;  %v2965_v40 = vadd.f32 %v3875_v39, %v2956_v62 }
 0x6ec   : > { %v4455_v22 = vadd.f32 %v3552_v35, %v2965_v40  ;;  %v2981_v41 = vsel %vm655_vm1, %v4453_v38, 0.0  ;;  %v3150_v40 = vld [vmem:[%s4076_s16 + $0x98] sm:$0xff] }
 0x6ed   : > { %2982 = vadd.xlane.f32.xlu1 %v2981_v41  ;;  %3219 = vmatpush2.msra.mxu0 %v3150_v40  ;;  %v3149_v41 = vld [vmem:[%s4076_s16 + $0x90] sm:$0xff] }
 0x6ee   : > { %v2978_v42 = vsel %vm655_vm1, %v4455_v22, 0.0  ;;  %3220 = vmatprep.subr.mxu0 %v3912_v20 }
 0x6ef   : > { %2979 = vadd.xlane.f32.xlu0 %v2978_v42  ;;  %3221 = vmatpush2.msra.mxu0 %v3149_v41  ;;  %v3148_v42 = vld [vmem:[%s4076_s16 + $0x88] sm:$0xff] }
 0x6f0   : > { %3222 = vmatprep.subr.mxu0 %v3912_v20 }
 0x6f1   : > { %3223 = vmatpush2.msra.mxu0 %v3148_v42 }
 0x6f2   : > { %3224 = vmatprep.subr.mxu0 %v3912_v20 }
 0x776   : > { %v2983_v43 = vpop.xlane.xlu1 %2982 }
 0x777   : > { %v2985_v44 = vmul.f32 0.020833334, %v2983_v43  ;;  %v3147_v43 = vld [vmem:[%s4076_s16 + $0x80] sm:$0xff] }
 0x778   : > { %v2980_v48 = vpop.xlane.xlu0 %2979  ;;  %3225 = vmatpush2.msra.mxu0 %v3147_v43 }
 0x779   : > { %v2984_v49 = vmul.f32 0.020833334, %v2980_v48  ;;  %v4462_v32 = vsub.f32 %v4453_v38, %v2985_v44  ;;  %v3034_v44 = vlaneseq }
 0x77b   : > { %v4465_v50 = vsub.f32 %v4455_v22, %v2984_v49  ;;  %v2989_v52 = vmul.f32 %v4462_v32, %v4462_v32  ;;  %v3035_v48 = vshrl.u32 %v3034_v44, 7 }
 0x77d   : > { %v2988_v46 = vmul.f32 %v4465_v50, %v4465_v50  ;;  %v2993_v53 = vsel %vm655_vm1, %v2989_v52, 0.0  ;;  %v3036_v49 = vsub.s32 0, %v3035_v48 }
 0x77f   : > { %v2990_v51 = vsel %vm655_vm1, %v2988_v46, 0.0 }
 0x780   : > { %2991 = vadd.xlane.f32.xlu0 %v2990_v51 }
 0x784   : > { %2994 = vadd.xlane.f32.xlu0 %v2993_v53 }
 0x809   : > { %v2992_v24 = vpop.xlane.xlu0 %2991 }
 0x80a   : > { %v2996_v16 = vmul.f32 0.020833334, %v2992_v24 }
 0x80c   : > { %v2998_v25 = vadd.f32 1e-05, %v2996_v16 }
 0x80d   : > { %v2995_v26 = vpop.xlane.xlu0 %2994 }
 0x80e   : > { %3870 = vrsqrt.f32 %v2998_v25  ;;  %v2997_v28 = vmul.f32 0.020833334, %v2995_v26 }
 0x810   : > { %v2999_v27 = vadd.f32 1e-05, %v2997_v28 }
 0x812   : > { %3872 = vrsqrt.f32 %v2999_v27 }
 0x81b   : > { %v3871_v29 = vpop.eup %3870 }
 0x81c   : > { %v3002_v31 = vmul.f32 %v3871_v29, %v4465_v50  ;;  %v3040_v50 = vsub.s32 1, %v3035_v48 }
 0x81e   : > { %v3010_v34 = vmul.f32 %v3553_v30, %v3002_v31 }
 0x81f   : > { %v3873_v35 = vpop.eup %3872 }
 0x820   : > { %v3018_v36 = vadd.f32 %v3554_v33, %v3010_v34  ;;  %v3003_v37 = vmul.f32 %v3873_v35, %v4462_v32  ;;  %v3032_v32 = vld [vmem:[%s4067_s18] sm:$0x3] }
 0x821   : > { %v3037_v46 = vrot.slane %v3032_v32, %v3036_v49  ;;  %v3041_v51 = vrot.slane %v3032_v32, %v3040_v50 }
 0x822   : > { %3555 = vmatmul.mubr.msk.f32.vlgmr.msra.gmra.mxu1 %vm655_vm1, %v3018_v36  ;;  %v3011_v62 = vmul.f32 %v3553_v30, %v3003_v37 }
 0x823   : > { %3120 = vmatprep.mubr.f32.mxu1 %v3912_v20 }
 0x824   : > { %v3019_v39 = vadd.f32 %v3554_v33, %v3011_v62 }
 0x826   : > { %3556 = vmatmul.mubr.msk.f32.gmra.mxu1 %vm655_vm1, %v3019_v39 }
 0x8e2   : > { %v3116_v52 = vpop.f32.mrf.mxu1 }
 0x8e3   : > { %v3117_v53 = vadd.f32 %v3116_v52, %v3037_v46 }
 0x8e4   : > { %v3118_v54 = vpop.f32.mrf.mxu1 }
 0x8e5   : > { %v3119_v55 = vadd.f32 %v3118_v54, %v3041_v51  ;;  %v3127_v58 = vmax.f32 %v3117_v53, 0.0 }
 0x8e6   : > { %v3122_v56 = vpop.f32.mrf.mxu1 }
 0x8e7   : > { %v3128_v57 = vmax.f32 %v3119_v55, 0.0  ;;  %v3123_v59 = vadd.f32 %v3122_v56, %v3037_v46 }
 0x8e8   : > { %v3124_v20 = vpop.f32.mrf.mxu1 }
 0x8e9   : > { %v3125_v60 = vadd.f32 %v3124_v20, %v3041_v51  ;;  %3557 = vmatprep.mubr.msk.f32.mxu0 %vm3155_vm10, %v3128_v57  ;;  %v3129_v63 = vmax.f32 %v3123_v59, 0.0 }
 0x8ea   : > { %3227 = vmatmul.mubr.f32.vlgmr.msra.gmra.mxu0 %v3127_v58 }
 0x8eb   : > { %v3130_v61 = vmax.f32 %v3125_v60, 0.0 }
 0x8ed   : > { %3558 = vmatprep.mubr.msk.f32.mxu0 %vm3155_vm10, %v3130_v61 }
 0x8ee   : > { %3232 = vmatmul.mubr.f32.gmra.mxu0 %v3129_v63 }
 0x9aa   : > { %v3228_v0 = vpop.f32.mrf.mxu0 }
 0x9ab   : > { %v3237_v3 = vadd.f32 %v3228_v0, %v4455_v22 }
 0x9ac   : > { %v3230_v45 = vpop.f32.mrf.mxu0 }
 0x9ad   : > { %v3246_v6 = vadd.f32 %v3559_v2, %v3237_v3 }
 0x9ae   : > { %v3233_v7 = vpop.f32.mrf.mxu0 }
 0x9af   : > { %3248 = vst.msk [vmem:[#allocation2] sm:$0xff] %vm655_vm1, %v3246_v6  ;;  %v3238_v1 = vadd.f32 %v3233_v7, %v4453_v38  ;;  %3253 = sbr.rel (%p3560_p5) target bundleno = 2695 (0xa87), region = 88 }
 0x9b0   : > { %v3235_v4 = vpop.f32.mrf.mxu0 }
 0x9b1   : > { %v3247_v9 = vadd.f32 %v3559_v2, %v3238_v1 }
 0x9b3   : > { %3249 = vst.msk [vmem:[#allocation2 + $0x8] sm:$0xff] %vm655_vm1, %v3247_v9 }
 0x9b4   : > { %v3259_v10 = vld [vmem:[%s4628_s20 + $0x28] sm:$0xff]  ;;  %v3258_v22 = vld [vmem:[%s4628_s20 + $0x20] sm:$0xff]  ;;  %3779 = vmatprep.mubr.msk.f32.mxu0 %vm655_vm1, %v3246_v6  ;;  %v3257_v38 = vld [vmem:[%s4628_s20 + $0x18] sm:$0xff] }
 0x9b5   : > { %3767 = vmatprep.subr.mxu0 %v3259_v10  ;;  %v3256_v5 = vld [vmem:[%s4628_s20 + $0x10] sm:$0xff]  ;;  %v3255_v47 = vld [vmem:[%s4628_s20 + $0x8] sm:$0xff]  ;;  %v3254_v12 = vld [vmem:[%s4628_s20] sm:$0xff] }
 0x9b6   : > { %3768 = vmatpush3.msra.mxu0 %v3259_v10  ;;  %v3561_v13 = vld [vmem:[%s4629_s17] ss:$0 sm:$0xff] }
 0x9b7   : > { %3769 = vmatprep.subr.mxu0 %v3258_v22 }
 0x9b8   : > { %3770 = vmatpush3.msra.mxu0 %v3258_v22 }
 0x9b9   : > { %3771 = vmatprep.subr.mxu0 %v3257_v38 }
 0x9ba   : > { %3772 = vmatpush3.msra.mxu0 %v3257_v38 }
 0x9bb   : > { %3773 = vmatprep.subr.mxu0 %v3256_v5 }
 0x9bc   : > { %3774 = vmatpush3.msra.mxu0 %v3256_v5 }
 0x9bd   : > { %3775 = vmatprep.subr.mxu0 %v3255_v47 }
 0x9be   : > { %3776 = vmatpush3.msra.mxu0 %v3255_v47 }
 0x9bf   : > { %3777 = vmatprep.subr.mxu0 %v3254_v12 }
 0x9c0   : > { %3778 = vmatpush3.msra.mxu0 %v3254_v12 }
 0x9c1   : > { %3780 = vmatmul.mubr.msk.f32.vlgmr.msra.gmra.mxu0 %vm655_vm1, %v3247_v9 }
 0xa81   : > { %v3781_v14 = vpop.f32.mrf.mxu0 }
 0xa82   : > { %v3345_v15 = vadd.f32 %v3781_v14, %v3561_v13 }
 0xa83   : > { %v3339_v8 = vpop.f32.mrf.mxu0 }
 0xa84   : > { %3349 = vst [vmem:[#allocation5 + $0x8] sm:$0xff] %v3345_v15  ;;  %v3340_v17 = vadd.f32 %v3561_v13, %v3339_v8 }
 0xa86   : > { %3348 = vst [vmem:[#allocation5] sm:$0xff] %v3340_v17 }
 0xa87 PF: > { %p3789_p6 = scmp.eq.s32.totalorder %s4017_s19, 1  ;;  %s3929_s18 = smov [#allocation5]  }
 0xa88   : > { %s3356_s16 = sshll.u32 %s3929_s18, 4  ;;  %s3357_s16 = int_to_ptr.vmem [resolvable:$true] %s3356_s16 }
 0xa89   : > { %s3876_s21 = scalar_lea.vmem %s3357_s16, 256  ;;  %p3883_p10 = scmp.lt.s32.totalorder %s3357_s16, %s3357_s16 }
 0xa8a   : > { %p3877_p7 = scmp.ne.s32.totalorder %s3357_s16, %s3876_s21  ;;  %p3884_p11 = scmp.lt.s32.totalorder %s3876_s21, %s3876_s21 }
 0xa8c   : > { %p3878_p8 = pnand %p3877_p7, %p3789_p6  ;;  %p3885_p12 = por %p3884_p11, %p3883_p10 }
 0xa8e   : > { %p3879_p9 = pneg %p3878_p8 }
 0xa90   : > { %p3886_p13 = pnand %p3885_p12, %p3879_p9 }
 0xa92   : > { %3889 = shalt.err (!%p3886_p13)
}
 0xa93   : > { %s3930_s15 = smov 128   ;;  %s4630_s26 = sld [smem:[#allocation13_spill]] }
 0xa99   : > { %3786 = dma.vmem_to_hbm [thread:$0]  (%p3789_p6), %s3357_s16, 256, %s4630_s26, [#allocation6], %s3930_s15, %s3930_s15, %s3927_s25  }
 0xa9a   : > { %3905 = dma.done.wait (%p3789_p6), [#allocation6], 256  }
 0xa9b   : > { %3907 = vsyncadd (%p3789_p6), [#allocation6], 4294967040 }
 0xa9c PF: > { %s4631_s22 = sld [smem:[#allocation8_spill]] }
 0xaa2   : > { %s26_s18 = sadd.s32 1, %s4631_s22  }
 0xaa3   : > { %p23_p0 = scmp.ge.s32.totalorder %s26_s18, 4  }
 0xaa5   :  { %25 = sbr.rel (!%p23_p0) target bundleno = 7 (0x7), region = 145 }
 0xaaa   :  { %3372 = vsyncpa [#allocation6], 1 }
 0xaab   :  { %3374 = vsyncpa [#allocation6 + $0x1], 1 }

</bundles_post_ra>
